<compile_context>
chip_gen: v5e
topology: v5e:2x2
jax: 0.10.0
libtpu: 0.0.40
codegen_flags: <defaults>
</compile_context>

<pallas_src>
import jax
import jax.numpy as jnp
from jax import lax
from jax.experimental import pallas as pl
from jax.experimental.pallas import tpu as pltpu


def dkt_lstm_kernel(gx_ref, w_ref, h_out_ref, h_sc, c_sc):
    """One grid step = one (batch block, time chunk). Serial LSTM recurrence.

    gx_ref:    (Tc, Bc, 4*Ep)  fused, gate-reordered (i,f,o,g) input gates
    w_ref:     (Ep, 4*Ep)      fused, pre-transposed recurrent weights
    h_out_ref: (Tc, Bc, Ep)    hidden states (lane-dense output slab)
    h_sc/c_sc: (Bc, Ep)        carried LSTM state across time chunks
    """
    # Reset carried state at the first time chunk of each batch block.
    @pl.when(pl.program_id(1) == 0)
    def _():
        h_sc[...] = jnp.zeros_like(h_sc)
        c_sc[...] = jnp.zeros_like(c_sc)

    w = w_ref[...]                       # fused W_hh^T, resident in VMEM
    ep = h_sc.shape[1]                   # padded hidden size (multiple of 128)
    tc_steps = gx_ref.shape[0]           # static chunk length

    def step(tt, carry):
        h, c = carry
        # One fused MXU push per step: (Bc, Ep) @ (Ep, 4Ep).
        pre = gx_ref[tt] + jnp.dot(h, w, preferred_element_type=jnp.float32)
        # Gate order (i, f, o, g): one wide sigmoid pass + one tanh pass.
        ifo = jax.nn.sigmoid(pre[:, :3 * ep])
        g_g = jnp.tanh(pre[:, 3 * ep:])
        i_g = ifo[:, :ep]
        f_g = ifo[:, ep:2 * ep]
        o_g = ifo[:, 2 * ep:]
        c_new = f_g * c + i_g * g_g
        h_new = o_g * jnp.tanh(c_new)
        h_out_ref[tt] = h_new            # lane-dense (Bc, Ep) store
        return (h_new, c_new)

    h_fin, c_fin = lax.fori_loop(
        0, tc_steps, step, (h_sc[...], c_sc[...]),
        unroll=min(8, tc_steps))
    h_sc[...] = h_fin
    c_sc[...] = c_fin


def _round_up(x, m):
    return -(-x // m) * m


def dkt_forward_pallas(q, a, next_q, params, *, t_chunk=64):
    """q, a, next_q: int32 (B, T). Returns sigmoid predictions (B, T)."""
    emb = params["embedding"].astype(jnp.float32)    # (V, E)
    E = emb.shape[1]
    B, T = q.shape

    Ep = _round_up(E, 128)                            # lane-dense hidden size

    # ---- glue: time-major gathers (no standalone activation transpose) ----
    s_tm = jnp.take(emb, q.T, axis=0)                 # (T, B, E)
    ns_tm = jnp.take(emb, next_q.T, axis=0)           # (T, B, E)  head stays time-major
    a_tm = a.T[:, :, None].astype(jnp.float32)        # (T, B, 1)

    w_ih = params["w_ih"].astype(jnp.float32)         # (4E, 2E), PyTorch order i,f,g,o
    w_hh = params["w_hh"].astype(jnp.float32)         # (4E, E)
    b_lstm = (params["b_ih"] + params["b_hh"]).astype(jnp.float32)  # (4E,)

    # ---- gate reorder (i, f, o, g) so sigmoid gates are contiguous ----
    order = (0, 1, 3, 2)
    w_ih_r = jnp.concatenate([w_ih[k * E:(k + 1) * E] for k in order], axis=0)
    w_hh_r = jnp.concatenate([w_hh[k * E:(k + 1) * E] for k in order], axis=0)
    b_r = jnp.concatenate([b_lstm[k * E:(k + 1) * E] for k in order], axis=0)

    # ---- hoisted input projection: one big matmul over all time steps ----
    # Fusion_Module: a=1 -> [s, 0], a=0 -> [0, s]; split W_ih columns instead
    # of materializing the concat.
    x1 = s_tm * a_tm                                  # (T, B, E)
    x0 = s_tm * (1.0 - a_tm)                          # (T, B, E)
    gates_x = (jnp.einsum("tbe,ge->tbg", x1, w_ih_r[:, :E],
                          preferred_element_type=jnp.float32)
               + jnp.einsum("tbe,ge->tbg", x0, w_ih_r[:, E:],
                            preferred_element_type=jnp.float32)
               + b_r)                                 # (T, B, 4E), order i,f,o,g

    # ---- fused, pre-transposed recurrent weight, padded to (Ep, 4Ep) ----
    w_fused = w_hh_r.T.reshape(E, 4, E)               # (E, 4, E)
    w_fused = jnp.pad(w_fused, ((0, Ep - E), (0, 0), (0, Ep - E)))
    w_fused = w_fused.reshape(Ep, 4 * Ep)             # (Ep, 4Ep)

    # ---- pad: batch to sublane multiple, time to chunk, E to Ep per gate ----
    B_pad = _round_up(B, 8)

    # Keep the double-buffered working set (fused gx in + h out ≈ 40*Tc*Bc*Ep
    # bytes) within a ~40 MiB VMEM budget; explicit limit set below (48 MiB,
    # safe on v7x's 64 MiB/TC as well as v5e/v6e).
    vmem_budget = 40 * 1024 * 1024
    per_step_bytes = 40 * Ep * B_pad
    tc_max = max(1, vmem_budget // per_step_bytes)
    Tc = int(max(1, min(t_chunk, tc_max, T)))
    T_pad = _round_up(T, Tc)

    gx = gates_x.reshape(T, B, 4, E)
    gx = jnp.pad(gx, ((0, T_pad - T), (0, B_pad - B), (0, 0), (0, Ep - E)))
    gx = gx.reshape(T_pad, B_pad, 4 * Ep)

    # Batch block: keep MXU rows full at small B; split for v7x dual-TC only
    # when batch is large enough that each block still has >=128 rows.
    if B_pad >= 256 and (B_pad // 2) % 8 == 0:
        Bc = B_pad // 2
    else:
        Bc = B_pad
    grid = (B_pad // Bc, T_pad // Tc)

    seq_spec = pl.BlockSpec((Tc, Bc, 4 * Ep), lambda b, tc: (tc, b, 0))
    out_spec = pl.BlockSpec((Tc, Bc, Ep), lambda b, tc: (tc, b, 0))
    w_spec = pl.BlockSpec((Ep, 4 * Ep), lambda b, tc: (0, 0))

    h_tm = pl.pallas_call(
        dkt_lstm_kernel,
        out_shape=jax.ShapeDtypeStruct((T_pad, B_pad, Ep), jnp.float32),
        grid_spec=pltpu.PrefetchScalarGridSpec(
            num_scalar_prefetch=0,
            grid=grid,
            in_specs=[seq_spec, w_spec],
            out_specs=out_spec,
            scratch_shapes=[
                pltpu.VMEM((Bc, Ep), jnp.float32),   # h carry
                pltpu.VMEM((Bc, Ep), jnp.float32),   # c carry
            ],
        ),
        compiler_params=pltpu.CompilerParams(
            dimension_semantics=("parallel", "arbitrary"),
            vmem_limit_bytes=48 * 1024 * 1024),
    )(gx, w_fused)

    # crop padding; stay time-major through the head (no (B,T,E) transpose)
    h_c = h_tm[:T, :B, :E]                            # (T, B, E)

    # ---- head (outside the serial loop): split-weight sums, big matmuls ----
    w_hid = params["w_hidden"].astype(jnp.float32)    # (E, 2E)
    b_hid = params["b_hidden"].astype(jnp.float32)    # (E,)
    w_pred = params["w_predict"].astype(jnp.float32)  # (1, E)
    b_pred = params["b_predict"].astype(jnp.float32)  # (1,)

    y = (jnp.einsum("tbe,he->tbh", h_c, w_hid[:, :E],
                    preferred_element_type=jnp.float32)
         + jnp.einsum("tbe,he->tbh", ns_tm, w_hid[:, E:],
                      preferred_element_type=jnp.float32)
         + b_hid)
    y = jnp.maximum(y, 0.0)
    y = jnp.einsum("tbh,ph->tbp", y, w_pred,
                   preferred_element_type=jnp.float32) + b_pred
    return jnp.transpose(jax.nn.sigmoid(y)[..., 0], (1, 0))   # (B, T)


# ---------------- pure-JAX reference (for correctness check) ----------------
def dkt_forward_ref(q, a, next_q, params):
    emb = params["embedding"]
    E = emb.shape[1]
    s = jnp.take(emb, q, axis=0)
    ns = jnp.take(emb, next_q, axis=0)
    a_f = a[..., None].astype(jnp.float32)
    x = jnp.concatenate([s * a_f, s * (1.0 - a_f)], axis=-1)   # (B, T, 2E)

    w_ih, w_hh = params["w_ih"], params["w_hh"]
    b = params["b_ih"] + params["b_hh"]
    B = q.shape[0]

    def step(carry, x_t):
        h, c = carry
        g = x_t @ w_ih.T + h @ w_hh.T + b
        i_g = jax.nn.sigmoid(g[:, 0 * E:1 * E])
        f_g = jax.nn.sigmoid(g[:, 1 * E:2 * E])
        g_g = jnp.tanh(g[:, 2 * E:3 * E])
        o_g = jax.nn.sigmoid(g[:, 3 * E:4 * E])
        c_n = f_g * c + i_g * g_g
        h_n = o_g * jnp.tanh(c_n)
        return (h_n, c_n), h_n

    h0 = jnp.zeros((B, E), jnp.float32)
    c0 = jnp.zeros((B, E), jnp.float32)
    _, hs = lax.scan(step, (h0, c0), jnp.transpose(x, (1, 0, 2)))
    stu = jnp.transpose(hs, (1, 0, 2))                          # (B, T, E)

    y = jnp.concatenate([stu, ns], axis=-1)
    y = y @ params["w_hidden"].T + params["b_hidden"]
    y = jnp.maximum(y, 0.0)
    y = y @ params["w_predict"].T + params["b_predict"]
    return jax.nn.sigmoid(y)[..., 0]


def make_params(key, num_problems, E):
    ks = jax.random.split(key, 9)
    scale = 1.0 / jnp.sqrt(E)
    u = lambda k, shp: jax.random.uniform(k, shp, jnp.float32, -scale, scale)
    return {
        "embedding": jax.random.normal(ks[0], (num_problems, E), jnp.float32),
        "w_ih": u(ks[1], (4 * E, 2 * E)),
        "w_hh": u(ks[2], (4 * E, E)),
        "b_ih": u(ks[3], (4 * E,)),
        "b_hh": u(ks[4], (4 * E,)),
        "w_hidden": u(ks[5], (E, 2 * E)),
        "b_hidden": u(ks[6], (E,)),
        "w_predict": u(ks[7], (1, E)),
        "b_predict": u(ks[8], (1,)),
    }


if __name__ == "__main__":
    B, T, E, V = 2, 8, 32, 20
    key = jax.random.PRNGKey(0)
    kq, ka, knq, kp = jax.random.split(key, 4)

    q = jax.random.randint(kq, (B, T), 0, V, dtype=jnp.int32)
    next_q = jax.random.randint(knq, (B, T), 0, V, dtype=jnp.int32)
    a = jax.random.randint(ka, (B, T), 0, 2, dtype=jnp.int32)
    params = make_params(kp, V, E)

    y = dkt_forward_pallas(q, a, next_q, params)
    jax.block_until_ready(y)

    y_ref = dkt_forward_ref(q, a, next_q, params)
    assert y.shape == (B, T)
    assert jnp.allclose(y, y_ref, atol=1e-4, rtol=1e-4), "mismatch vs reference"

    print("KERNEL_OK")
</pallas_src>

<mosaic_0001>
module attributes {stable_mosaic.version = 11 : i64} {
  func.func @dkt_lstm_kernel(%arg0: i32, %arg1: i32, %arg2: memref<8x8x512xf32, #tpu.memory_space<vmem>>, %arg3: memref<128x512xf32, #tpu.memory_space<vmem>>, %arg4: memref<8x8x128xf32, #tpu.memory_space<vmem>>, %arg5: memref<8x128xf32, #tpu.memory_space<vmem>>, %arg6: memref<8x128xf32, #tpu.memory_space<vmem>>) attributes {dimension_semantics = [#tpu.dimension_semantics<parallel>, #tpu.dimension_semantics<arbitrary>], iteration_bounds = array<i64: 1, 1>, scalar_prefetch = 0 : i64, scratch_operands = 2 : i64, tpu.core_type = #tpu.core_type<tc>, window_params = [{transform_indices = @transform_0, window_bounds = array<i64: 8, 8, 512>}, {pipeline_mode = #tpu.pipeline_mode<synchronous>, transform_indices = @transform_1, window_bounds = array<i64: 128, 512>}, {transform_indices = @transform_2, window_bounds = array<i64: 8, 8, 128>}]} {
    %c0_i32 = arith.constant 0 : i32
    %0 = arith.cmpi eq, %arg1, %c0_i32 : i32
    %1 = arith.extui %0 : i1 to i32
    %c0_i32_0 = arith.constant 0 : i32
    %2 = arith.cmpi ne, %1, %c0_i32_0 : i32
    scf.if %2 {
      %cst_58 = arith.constant 0.000000e+00 : f32
      %208 = vector.broadcast %cst_58 : f32 to vector<8x128xf32>
      %c0_59 = arith.constant 0 : index
      %c0_60 = arith.constant 0 : index
      %209 = vector.load %arg5[%c0_59, %c0_60] : memref<8x128xf32, #tpu.memory_space<vmem>>, vector<8x128xf32>
      tpu.vector_store %arg5[%c0_59, %c0_60], %208 {strides = array<i32>} : memref<8x128xf32, #tpu.memory_space<vmem>>, vector<8x128xf32>,
      %cst_61 = arith.constant 0.000000e+00 : f32
      %210 = vector.broadcast %cst_61 : f32 to vector<8x128xf32>
      %c0_62 = arith.constant 0 : index
      %c0_63 = arith.constant 0 : index
      %211 = vector.load %arg6[%c0_62, %c0_63] : memref<8x128xf32, #tpu.memory_space<vmem>>, vector<8x128xf32>
      tpu.vector_store %arg6[%c0_62, %c0_63], %210 {strides = array<i32>} : memref<8x128xf32, #tpu.memory_space<vmem>>, vector<8x128xf32>,
    } else {
    }
    %c0 = arith.constant 0 : index
    %c0_1 = arith.constant 0 : index
    %3 = vector.load %arg3[%c0, %c0_1] : memref<128x512xf32, #tpu.memory_space<vmem>>, vector<128x512xf32>
    %c0_2 = arith.constant 0 : index
    %c0_3 = arith.constant 0 : index
    %4 = vector.load %arg5[%c0_2, %c0_3] : memref<8x128xf32, #tpu.memory_space<vmem>>, vector<8x128xf32>
    %c0_4 = arith.constant 0 : index
    %c0_5 = arith.constant 0 : index
    %5 = vector.load %arg6[%c0_4, %c0_5] : memref<8x128xf32, #tpu.memory_space<vmem>>, vector<8x128xf32>
    %c0_i32_6 = arith.constant 0 : i32
    %6 = arith.index_cast %c0_i32_6 : i32 to index
    %c0_7 = arith.constant 0 : index
    %c0_8 = arith.constant 0 : index
    %7 = vector.load %arg2[%6, %c0_7, %c0_8] : memref<8x8x512xf32, #tpu.memory_space<vmem>>, vector<1x8x512xf32>
    %8 = vector.shape_cast %7 : vector<1x8x512xf32> to vector<8x512xf32>
    %cst = arith.constant dense<0.000000e+00> : vector<8x512xf32>
    %9 = tpu.matmul %4, %3, %cst {dimension_numbers = #tpu.dot_dimension_numbers<[1], [0], [0], [1], [0, 0, 1, 1], [], []>} : vector<8x128xf32>, vector<128x512xf32>, vector<8x512xf32> -> vector<8x512xf32>
    %10 = arith.addf %8, %9 : vector<8x512xf32>
    %11 = vector.extract_strided_slice %10 {offsets = [0, 0], sizes = [8, 384], strides = [1, 1]} : vector<8x512xf32> to vector<8x384xf32>
    %12 = arith.negf %11 : vector<8x384xf32>
    %13 = math.exp %12 : vector<8x384xf32>
    %cst_9 = arith.constant 1.000000e+00 : f32
    %14 = vector.broadcast %cst_9 : f32 to vector<8x384xf32>
    %15 = arith.addf %14, %13 : vector<8x384xf32>
    %16 = arith.divf %14, %15 : vector<8x384xf32>
    %17 = vector.extract_strided_slice %10 {offsets = [0, 384], sizes = [8, 128], strides = [1, 1]} : vector<8x512xf32> to vector<8x128xf32>
    %18 = math.tanh %17 : vector<8x128xf32>
    %19 = vector.extract_strided_slice %16 {offsets = [0, 0], sizes = [8, 128], strides = [1, 1]} : vector<8x384xf32> to vector<8x128xf32>
    %20 = vector.extract_strided_slice %16 {offsets = [0, 128], sizes = [8, 128], strides = [1, 1]} : vector<8x384xf32> to vector<8x128xf32>
    %21 = vector.extract_strided_slice %16 {offsets = [0, 256], sizes = [8, 128], strides = [1, 1]} : vector<8x384xf32> to vector<8x128xf32>
    %22 = arith.mulf %20, %5 : vector<8x128xf32>
    %23 = arith.mulf %19, %18 : vector<8x128xf32>
    %24 = arith.addf %22, %23 : vector<8x128xf32>
    %25 = math.tanh %24 : vector<8x128xf32>
    %26 = arith.mulf %21, %25 : vector<8x128xf32>
    %27 = arith.index_cast %c0_i32_6 : i32 to index
    %c0_10 = arith.constant 0 : index
    %c0_11 = arith.constant 0 : index
    %28 = vector.load %arg4[%27, %c0_10, %c0_11] : memref<8x8x128xf32, #tpu.memory_space<vmem>>, vector<1x8x128xf32>
    %29 = vector.shape_cast %28 : vector<1x8x128xf32> to vector<8x128xf32>
    %30 = vector.shape_cast %26 : vector<8x128xf32> to vector<1x8x128xf32>
    tpu.vector_store %arg4[%27, %c0_10, %c0_11], %30 {strides = array<i32>} : memref<8x8x128xf32, #tpu.memory_space<vmem>>, vector<1x8x128xf32>,
    %c1_i32 = arith.constant 1 : i32
    %31 = arith.index_cast %c1_i32 : i32 to index
    %c0_12 = arith.constant 0 : index
    %c0_13 = arith.constant 0 : index
    %32 = vector.load %arg2[%31, %c0_12, %c0_13] : memref<8x8x512xf32, #tpu.memory_space<vmem>>, vector<1x8x512xf32>
    %33 = vector.shape_cast %32 : vector<1x8x512xf32> to vector<8x512xf32>
    %cst_14 = arith.constant dense<0.000000e+00> : vector<8x512xf32>
    %34 = tpu.matmul %26, %3, %cst_14 {dimension_numbers = #tpu.dot_dimension_numbers<[1], [0], [0], [1], [0, 0, 1, 1], [], []>} : vector<8x128xf32>, vector<128x512xf32>, vector<8x512xf32> -> vector<8x512xf32>
    %35 = arith.addf %33, %34 : vector<8x512xf32>
    %36 = vector.extract_strided_slice %35 {offsets = [0, 0], sizes = [8, 384], strides = [1, 1]} : vector<8x512xf32> to vector<8x384xf32>
    %37 = arith.negf %36 : vector<8x384xf32>
    %38 = math.exp %37 : vector<8x384xf32>
    %cst_15 = arith.constant 1.000000e+00 : f32
    %39 = vector.broadcast %cst_15 : f32 to vector<8x384xf32>
    %40 = arith.addf %39, %38 : vector<8x384xf32>
    %41 = arith.divf %39, %40 : vector<8x384xf32>
    %42 = vector.extract_strided_slice %35 {offsets = [0, 384], sizes = [8, 128], strides = [1, 1]} : vector<8x512xf32> to vector<8x128xf32>
    %43 = math.tanh %42 : vector<8x128xf32>
    %44 = vector.extract_strided_slice %41 {offsets = [0, 0], sizes = [8, 128], strides = [1, 1]} : vector<8x384xf32> to vector<8x128xf32>
    %45 = vector.extract_strided_slice %41 {offsets = [0, 128], sizes = [8, 128], strides = [1, 1]} : vector<8x384xf32> to vector<8x128xf32>
    %46 = vector.extract_strided_slice %41 {offsets = [0, 256], sizes = [8, 128], strides = [1, 1]} : vector<8x384xf32> to vector<8x128xf32>
    %47 = arith.mulf %45, %24 : vector<8x128xf32>
    %48 = arith.mulf %44, %43 : vector<8x128xf32>
    %49 = arith.addf %47, %48 : vector<8x128xf32>
    %50 = math.tanh %49 : vector<8x128xf32>
    %51 = arith.mulf %46, %50 : vector<8x128xf32>
    %52 = arith.index_cast %c1_i32 : i32 to index
    %c0_16 = arith.constant 0 : index
    %c0_17 = arith.constant 0 : index
    %53 = vector.load %arg4[%52, %c0_16, %c0_17] : memref<8x8x128xf32, #tpu.memory_space<vmem>>, vector<1x8x128xf32>
    %54 = vector.shape_cast %53 : vector<1x8x128xf32> to vector<8x128xf32>
    %55 = vector.shape_cast %51 : vector<8x128xf32> to vector<1x8x128xf32>
    tpu.vector_store %arg4[%52, %c0_16, %c0_17], %55 {strides = array<i32>} : memref<8x8x128xf32, #tpu.memory_space<vmem>>, vector<1x8x128xf32>,
    %c2_i32 = arith.constant 2 : i32
    %56 = arith.index_cast %c2_i32 : i32 to index
    %c0_18 = arith.constant 0 : index
    %c0_19 = arith.constant 0 : index
    %57 = vector.load %arg2[%56, %c0_18, %c0_19] : memref<8x8x512xf32, #tpu.memory_space<vmem>>, vector<1x8x512xf32>
    %58 = vector.shape_cast %57 : vector<1x8x512xf32> to vector<8x512xf32>
    %cst_20 = arith.constant dense<0.000000e+00> : vector<8x512xf32>
    %59 = tpu.matmul %51, %3, %cst_20 {dimension_numbers = #tpu.dot_dimension_numbers<[1], [0], [0], [1], [0, 0, 1, 1], [], []>} : vector<8x128xf32>, vector<128x512xf32>, vector<8x512xf32> -> vector<8x512xf32>
    %60 = arith.addf %58, %59 : vector<8x512xf32>
    %61 = vector.extract_strided_slice %60 {offsets = [0, 0], sizes = [8, 384], strides = [1, 1]} : vector<8x512xf32> to vector<8x384xf32>
    %62 = arith.negf %61 : vector<8x384xf32>
    %63 = math.exp %62 : vector<8x384xf32>
    %cst_21 = arith.constant 1.000000e+00 : f32
    %64 = vector.broadcast %cst_21 : f32 to vector<8x384xf32>
    %65 = arith.addf %64, %63 : vector<8x384xf32>
    %66 = arith.divf %64, %65 : vector<8x384xf32>
    %67 = vector.extract_strided_slice %60 {offsets = [0, 384], sizes = [8, 128], strides = [1, 1]} : vector<8x512xf32> to vector<8x128xf32>
    %68 = math.tanh %67 : vector<8x128xf32>
    %69 = vector.extract_strided_slice %66 {offsets = [0, 0], sizes = [8, 128], strides = [1, 1]} : vector<8x384xf32> to vector<8x128xf32>
    %70 = vector.extract_strided_slice %66 {offsets = [0, 128], sizes = [8, 128], strides = [1, 1]} : vector<8x384xf32> to vector<8x128xf32>
    %71 = vector.extract_strided_slice %66 {offsets = [0, 256], sizes = [8, 128], strides = [1, 1]} : vector<8x384xf32> to vector<8x128xf32>
    %72 = arith.mulf %70, %49 : vector<8x128xf32>
    %73 = arith.mulf %69, %68 : vector<8x128xf32>
    %74 = arith.addf %72, %73 : vector<8x128xf32>
    %75 = math.tanh %74 : vector<8x128xf32>
    %76 = arith.mulf %71, %75 : vector<8x128xf32>
    %77 = arith.index_cast %c2_i32 : i32 to index
    %c0_22 = arith.constant 0 : index
    %c0_23 = arith.constant 0 : index
    %78 = vector.load %arg4[%77, %c0_22, %c0_23] : memref<8x8x128xf32, #tpu.memory_space<vmem>>, vector<1x8x128xf32>
    %79 = vector.shape_cast %78 : vector<1x8x128xf32> to vector<8x128xf32>
    %80 = vector.shape_cast %76 : vector<8x128xf32> to vector<1x8x128xf32>
    tpu.vector_store %arg4[%77, %c0_22, %c0_23], %80 {strides = array<i32>} : memref<8x8x128xf32, #tpu.memory_space<vmem>>, vector<1x8x128xf32>,
    %c3_i32 = arith.constant 3 : i32
    %81 = arith.index_cast %c3_i32 : i32 to index
    %c0_24 = arith.constant 0 : index
    %c0_25 = arith.constant 0 : index
    %82 = vector.load %arg2[%81, %c0_24, %c0_25] : memref<8x8x512xf32, #tpu.memory_space<vmem>>, vector<1x8x512xf32>
    %83 = vector.shape_cast %82 : vector<1x8x512xf32> to vector<8x512xf32>
    %cst_26 = arith.constant dense<0.000000e+00> : vector<8x512xf32>
    %84 = tpu.matmul %76, %3, %cst_26 {dimension_numbers = #tpu.dot_dimension_numbers<[1], [0], [0], [1], [0, 0, 1, 1], [], []>} : vector<8x128xf32>, vector<128x512xf32>, vector<8x512xf32> -> vector<8x512xf32>
    %85 = arith.addf %83, %84 : vector<8x512xf32>
    %86 = vector.extract_strided_slice %85 {offsets = [0, 0], sizes = [8, 384], strides = [1, 1]} : vector<8x512xf32> to vector<8x384xf32>
    %87 = arith.negf %86 : vector<8x384xf32>
    %88 = math.exp %87 : vector<8x384xf32>
    %cst_27 = arith.constant 1.000000e+00 : f32
    %89 = vector.broadcast %cst_27 : f32 to vector<8x384xf32>
    %90 = arith.addf %89, %88 : vector<8x384xf32>
    %91 = arith.divf %89, %90 : vector<8x384xf32>
    %92 = vector.extract_strided_slice %85 {offsets = [0, 384], sizes = [8, 128], strides = [1, 1]} : vector<8x512xf32> to vector<8x128xf32>
    %93 = math.tanh %92 : vector<8x128xf32>
    %94 = vector.extract_strided_slice %91 {offsets = [0, 0], sizes = [8, 128], strides = [1, 1]} : vector<8x384xf32> to vector<8x128xf32>
    %95 = vector.extract_strided_slice %91 {offsets = [0, 128], sizes = [8, 128], strides = [1, 1]} : vector<8x384xf32> to vector<8x128xf32>
    %96 = vector.extract_strided_slice %91 {offsets = [0, 256], sizes = [8, 128], strides = [1, 1]} : vector<8x384xf32> to vector<8x128xf32>
    %97 = arith.mulf %95, %74 : vector<8x128xf32>
    %98 = arith.mulf %94, %93 : vector<8x128xf32>
    %99 = arith.addf %97, %98 : vector<8x128xf32>
    %100 = math.tanh %99 : vector<8x128xf32>
    %101 = arith.mulf %96, %100 : vector<8x128xf32>
    %102 = arith.index_cast %c3_i32 : i32 to index
    %c0_28 = arith.constant 0 : index
    %c0_29 = arith.constant 0 : index
    %103 = vector.load %arg4[%102, %c0_28, %c0_29] : memref<8x8x128xf32, #tpu.memory_space<vmem>>, vector<1x8x128xf32>
    %104 = vector.shape_cast %103 : vector<1x8x128xf32> to vector<8x128xf32>
    %105 = vector.shape_cast %101 : vector<8x128xf32> to vector<1x8x128xf32>
    tpu.vector_store %arg4[%102, %c0_28, %c0_29], %105 {strides = array<i32>} : memref<8x8x128xf32, #tpu.memory_space<vmem>>, vector<1x8x128xf32>,
    %c4_i32 = arith.constant 4 : i32
    %106 = arith.index_cast %c4_i32 : i32 to index
    %c0_30 = arith.constant 0 : index
    %c0_31 = arith.constant 0 : index
    %107 = vector.load %arg2[%106, %c0_30, %c0_31] : memref<8x8x512xf32, #tpu.memory_space<vmem>>, vector<1x8x512xf32>
    %108 = vector.shape_cast %107 : vector<1x8x512xf32> to vector<8x512xf32>
    %cst_32 = arith.constant dense<0.000000e+00> : vector<8x512xf32>
    %109 = tpu.matmul %101, %3, %cst_32 {dimension_numbers = #tpu.dot_dimension_numbers<[1], [0], [0], [1], [0, 0, 1, 1], [], []>} : vector<8x128xf32>, vector<128x512xf32>, vector<8x512xf32> -> vector<8x512xf32>
    %110 = arith.addf %108, %109 : vector<8x512xf32>
    %111 = vector.extract_strided_slice %110 {offsets = [0, 0], sizes = [8, 384], strides = [1, 1]} : vector<8x512xf32> to vector<8x384xf32>
    %112 = arith.negf %111 : vector<8x384xf32>
    %113 = math.exp %112 : vector<8x384xf32>
    %cst_33 = arith.constant 1.000000e+00 : f32
    %114 = vector.broadcast %cst_33 : f32 to vector<8x384xf32>
    %115 = arith.addf %114, %113 : vector<8x384xf32>
    %116 = arith.divf %114, %115 : vector<8x384xf32>
    %117 = vector.extract_strided_slice %110 {offsets = [0, 384], sizes = [8, 128], strides = [1, 1]} : vector<8x512xf32> to vector<8x128xf32>
    %118 = math.tanh %117 : vector<8x128xf32>
    %119 = vector.extract_strided_slice %116 {offsets = [0, 0], sizes = [8, 128], strides = [1, 1]} : vector<8x384xf32> to vector<8x128xf32>
    %120 = vector.extract_strided_slice %116 {offsets = [0, 128], sizes = [8, 128], strides = [1, 1]} : vector<8x384xf32> to vector<8x128xf32>
    %121 = vector.extract_strided_slice %116 {offsets = [0, 256], sizes = [8, 128], strides = [1, 1]} : vector<8x384xf32> to vector<8x128xf32>
    %122 = arith.mulf %120, %99 : vector<8x128xf32>
    %123 = arith.mulf %119, %118 : vector<8x128xf32>
    %124 = arith.addf %122, %123 : vector<8x128xf32>
    %125 = math.tanh %124 : vector<8x128xf32>
    %126 = arith.mulf %121, %125 : vector<8x128xf32>
    %127 = arith.index_cast %c4_i32 : i32 to index
    %c0_34 = arith.constant 0 : index
    %c0_35 = arith.constant 0 : index
    %128 = vector.load %arg4[%127, %c0_34, %c0_35] : memref<8x8x128xf32, #tpu.memory_space<vmem>>, vector<1x8x128xf32>
    %129 = vector.shape_cast %128 : vector<1x8x128xf32> to vector<8x128xf32>
    %130 = vector.shape_cast %126 : vector<8x128xf32> to vector<1x8x128xf32>
    tpu.vector_store %arg4[%127, %c0_34, %c0_35], %130 {strides = array<i32>} : memref<8x8x128xf32, #tpu.memory_space<vmem>>, vector<1x8x128xf32>,
    %c5_i32 = arith.constant 5 : i32
    %131 = arith.index_cast %c5_i32 : i32 to index
    %c0_36 = arith.constant 0 : index
    %c0_37 = arith.constant 0 : index
    %132 = vector.load %arg2[%131, %c0_36, %c0_37] : memref<8x8x512xf32, #tpu.memory_space<vmem>>, vector<1x8x512xf32>
    %133 = vector.shape_cast %132 : vector<1x8x512xf32> to vector<8x512xf32>
    %cst_38 = arith.constant dense<0.000000e+00> : vector<8x512xf32>
    %134 = tpu.matmul %126, %3, %cst_38 {dimension_numbers = #tpu.dot_dimension_numbers<[1], [0], [0], [1], [0, 0, 1, 1], [], []>} : vector<8x128xf32>, vector<128x512xf32>, vector<8x512xf32> -> vector<8x512xf32>
    %135 = arith.addf %133, %134 : vector<8x512xf32>
    %136 = vector.extract_strided_slice %135 {offsets = [0, 0], sizes = [8, 384], strides = [1, 1]} : vector<8x512xf32> to vector<8x384xf32>
    %137 = arith.negf %136 : vector<8x384xf32>
    %138 = math.exp %137 : vector<8x384xf32>
    %cst_39 = arith.constant 1.000000e+00 : f32
    %139 = vector.broadcast %cst_39 : f32 to vector<8x384xf32>
    %140 = arith.addf %139, %138 : vector<8x384xf32>
    %141 = arith.divf %139, %140 : vector<8x384xf32>
    %142 = vector.extract_strided_slice %135 {offsets = [0, 384], sizes = [8, 128], strides = [1, 1]} : vector<8x512xf32> to vector<8x128xf32>
    %143 = math.tanh %142 : vector<8x128xf32>
    %144 = vector.extract_strided_slice %141 {offsets = [0, 0], sizes = [8, 128], strides = [1, 1]} : vector<8x384xf32> to vector<8x128xf32>
    %145 = vector.extract_strided_slice %141 {offsets = [0, 128], sizes = [8, 128], strides = [1, 1]} : vector<8x384xf32> to vector<8x128xf32>
    %146 = vector.extract_strided_slice %141 {offsets = [0, 256], sizes = [8, 128], strides = [1, 1]} : vector<8x384xf32> to vector<8x128xf32>
    %147 = arith.mulf %145, %124 : vector<8x128xf32>
    %148 = arith.mulf %144, %143 : vector<8x128xf32>
    %149 = arith.addf %147, %148 : vector<8x128xf32>
    %150 = math.tanh %149 : vector<8x128xf32>
    %151 = arith.mulf %146, %150 : vector<8x128xf32>
    %152 = arith.index_cast %c5_i32 : i32 to index
    %c0_40 = arith.constant 0 : index
    %c0_41 = arith.constant 0 : index
    %153 = vector.load %arg4[%152, %c0_40, %c0_41] : memref<8x8x128xf32, #tpu.memory_space<vmem>>, vector<1x8x128xf32>
    %154 = vector.shape_cast %153 : vector<1x8x128xf32> to vector<8x128xf32>
    %155 = vector.shape_cast %151 : vector<8x128xf32> to vector<1x8x128xf32>
    tpu.vector_store %arg4[%152, %c0_40, %c0_41], %155 {strides = array<i32>} : memref<8x8x128xf32, #tpu.memory_space<vmem>>, vector<1x8x128xf32>,
    %c6_i32 = arith.constant 6 : i32
    %156 = arith.index_cast %c6_i32 : i32 to index
    %c0_42 = arith.constant 0 : index
    %c0_43 = arith.constant 0 : index
    %157 = vector.load %arg2[%156, %c0_42, %c0_43] : memref<8x8x512xf32, #tpu.memory_space<vmem>>, vector<1x8x512xf32>
    %158 = vector.shape_cast %157 : vector<1x8x512xf32> to vector<8x512xf32>
    %cst_44 = arith.constant dense<0.000000e+00> : vector<8x512xf32>
    %159 = tpu.matmul %151, %3, %cst_44 {dimension_numbers = #tpu.dot_dimension_numbers<[1], [0], [0], [1], [0, 0, 1, 1], [], []>} : vector<8x128xf32>, vector<128x512xf32>, vector<8x512xf32> -> vector<8x512xf32>
    %160 = arith.addf %158, %159 : vector<8x512xf32>
    %161 = vector.extract_strided_slice %160 {offsets = [0, 0], sizes = [8, 384], strides = [1, 1]} : vector<8x512xf32> to vector<8x384xf32>
    %162 = arith.negf %161 : vector<8x384xf32>
    %163 = math.exp %162 : vector<8x384xf32>
    %cst_45 = arith.constant 1.000000e+00 : f32
    %164 = vector.broadcast %cst_45 : f32 to vector<8x384xf32>
    %165 = arith.addf %164, %163 : vector<8x384xf32>
    %166 = arith.divf %164, %165 : vector<8x384xf32>
    %167 = vector.extract_strided_slice %160 {offsets = [0, 384], sizes = [8, 128], strides = [1, 1]} : vector<8x512xf32> to vector<8x128xf32>
    %168 = math.tanh %167 : vector<8x128xf32>
    %169 = vector.extract_strided_slice %166 {offsets = [0, 0], sizes = [8, 128], strides = [1, 1]} : vector<8x384xf32> to vector<8x128xf32>
    %170 = vector.extract_strided_slice %166 {offsets = [0, 128], sizes = [8, 128], strides = [1, 1]} : vector<8x384xf32> to vector<8x128xf32>
    %171 = vector.extract_strided_slice %166 {offsets = [0, 256], sizes = [8, 128], strides = [1, 1]} : vector<8x384xf32> to vector<8x128xf32>
    %172 = arith.mulf %170, %149 : vector<8x128xf32>
    %173 = arith.mulf %169, %168 : vector<8x128xf32>
    %174 = arith.addf %172, %173 : vector<8x128xf32>
    %175 = math.tanh %174 : vector<8x128xf32>
    %176 = arith.mulf %171, %175 : vector<8x128xf32>
    %177 = arith.index_cast %c6_i32 : i32 to index
    %c0_46 = arith.constant 0 : index
    %c0_47 = arith.constant 0 : index
    %178 = vector.load %arg4[%177, %c0_46, %c0_47] : memref<8x8x128xf32, #tpu.memory_space<vmem>>, vector<1x8x128xf32>
    %179 = vector.shape_cast %178 : vector<1x8x128xf32> to vector<8x128xf32>
    %180 = vector.shape_cast %176 : vector<8x128xf32> to vector<1x8x128xf32>
    tpu.vector_store %arg4[%177, %c0_46, %c0_47], %180 {strides = array<i32>} : memref<8x8x128xf32, #tpu.memory_space<vmem>>, vector<1x8x128xf32>,
    %c7_i32 = arith.constant 7 : i32
    %181 = arith.index_cast %c7_i32 : i32 to index
    %c0_48 = arith.constant 0 : index
    %c0_49 = arith.constant 0 : index
    %182 = vector.load %arg2[%181, %c0_48, %c0_49] : memref<8x8x512xf32, #tpu.memory_space<vmem>>, vector<1x8x512xf32>
    %183 = vector.shape_cast %182 : vector<1x8x512xf32> to vector<8x512xf32>
    %cst_50 = arith.constant dense<0.000000e+00> : vector<8x512xf32>
    %184 = tpu.matmul %176, %3, %cst_50 {dimension_numbers = #tpu.dot_dimension_numbers<[1], [0], [0], [1], [0, 0, 1, 1], [], []>} : vector<8x128xf32>, vector<128x512xf32>, vector<8x512xf32> -> vector<8x512xf32>
    %185 = arith.addf %183, %184 : vector<8x512xf32>
    %186 = vector.extract_strided_slice %185 {offsets = [0, 0], sizes = [8, 384], strides = [1, 1]} : vector<8x512xf32> to vector<8x384xf32>
    %187 = arith.negf %186 : vector<8x384xf32>
    %188 = math.exp %187 : vector<8x384xf32>
    %cst_51 = arith.constant 1.000000e+00 : f32
    %189 = vector.broadcast %cst_51 : f32 to vector<8x384xf32>
    %190 = arith.addf %189, %188 : vector<8x384xf32>
    %191 = arith.divf %189, %190 : vector<8x384xf32>
    %192 = vector.extract_strided_slice %185 {offsets = [0, 384], sizes = [8, 128], strides = [1, 1]} : vector<8x512xf32> to vector<8x128xf32>
    %193 = math.tanh %192 : vector<8x128xf32>
    %194 = vector.extract_strided_slice %191 {offsets = [0, 0], sizes = [8, 128], strides = [1, 1]} : vector<8x384xf32> to vector<8x128xf32>
    %195 = vector.extract_strided_slice %191 {offsets = [0, 128], sizes = [8, 128], strides = [1, 1]} : vector<8x384xf32> to vector<8x128xf32>
    %196 = vector.extract_strided_slice %191 {offsets = [0, 256], sizes = [8, 128], strides = [1, 1]} : vector<8x384xf32> to vector<8x128xf32>
    %197 = arith.mulf %195, %174 : vector<8x128xf32>
    %198 = arith.mulf %194, %193 : vector<8x128xf32>
    %199 = arith.addf %197, %198 : vector<8x128xf32>
    %200 = math.tanh %199 : vector<8x128xf32>
    %201 = arith.mulf %196, %200 : vector<8x128xf32>
    %202 = arith.index_cast %c7_i32 : i32 to index
    %c0_52 = arith.constant 0 : index
    %c0_53 = arith.constant 0 : index
    %203 = vector.load %arg4[%202, %c0_52, %c0_53] : memref<8x8x128xf32, #tpu.memory_space<vmem>>, vector<1x8x128xf32>
    %204 = vector.shape_cast %203 : vector<1x8x128xf32> to vector<8x128xf32>
    %205 = vector.shape_cast %201 : vector<8x128xf32> to vector<1x8x128xf32>
    tpu.vector_store %arg4[%202, %c0_52, %c0_53], %205 {strides = array<i32>} : memref<8x8x128xf32, #tpu.memory_space<vmem>>, vector<1x8x128xf32>,
    %c8_i32 = arith.constant 8 : i32
    %c0_54 = arith.constant 0 : index
    %c0_55 = arith.constant 0 : index
    %206 = vector.load %arg5[%c0_54, %c0_55] : memref<8x128xf32, #tpu.memory_space<vmem>>, vector<8x128xf32>
    tpu.vector_store %arg5[%c0_54, %c0_55], %201 {strides = array<i32>} : memref<8x128xf32, #tpu.memory_space<vmem>>, vector<8x128xf32>,
    %c0_56 = arith.constant 0 : index
    %c0_57 = arith.constant 0 : index
    %207 = vector.load %arg6[%c0_56, %c0_57] : memref<8x128xf32, #tpu.memory_space<vmem>>, vector<8x128xf32>
    tpu.vector_store %arg6[%c0_56, %c0_57], %199 {strides = array<i32>} : memref<8x128xf32, #tpu.memory_space<vmem>>, vector<8x128xf32>,
    return
  }
  func.func @transform_0(%arg0: i32, %arg1: i32) -> (i32, i32, i32) {
    %c0_i32 = arith.constant 0 : i32
    %c0_i32_0 = arith.constant 0 : i32
    return %arg1, %arg0, %c0_i32 : i32, i32, i32
  }
  func.func @transform_1(%arg0: i32, %arg1: i32) -> (i32, i32) {
    %c0_i32 = arith.constant 0 : i32
    %c0_i32_0 = arith.constant 0 : i32
    %c0_i32_1 = arith.constant 0 : i32
    return %c0_i32, %c0_i32_0 : i32, i32
  }
  func.func @transform_2(%arg0: i32, %arg1: i32) -> (i32, i32, i32) {
    %c0_i32 = arith.constant 0 : i32
    %c0_i32_0 = arith.constant 0 : i32
    return %arg1, %arg0, %c0_i32 : i32, i32, i32
  }
}

</mosaic_0001>

<bundles_post_ra>
// kernel: tpu_custom_call.1
= control target key start
LH: loop header
LB: loop body
LE: loop exit
PB: predicated region body
PF: predicated region fallthrough
CT: control target
= control target key end

     0   :  { %7 = vsyncpa [#allocation5], 0  ;;  %s2498_s0 = inlined_call_operand.hbm [shape: f32[8,8,512], index: 0, kind: input, shape index: {}]   ;;  %s2499_s1 = inlined_call_operand.hbm [shape: f32[128,512], index: 1, kind: input, shape index: {}]   ;;  %s2500_s2 = inlined_call_operand.hbm [shape: f32[8,8,128], index: 2, kind: output, shape index: {}]  }
   0x1   :  { %8 = vsyncpa [#allocation8], 0 }
   0x2   :  { %9 = vsyncpa [#allocation6], 0  ;;  %s14_s11 = sshll.u32 %s2498_s0, 4  ;;  %s1670_s12 = smov [#allocation4]   ;;  %s15_s11 = int_to_ptr.hbm [resolvable:$true] %s14_s11 }
   0x3   :  { %s16_s13 = sshll.u32 %s1670_s12, 4  ;;  %s27_s16 = sshll.u32 %s2499_s1, 4  ;;  %s17_s13 = int_to_ptr.vmem [resolvable:$true] %s16_s13  ;;  %s28_s16 = int_to_ptr.hbm [resolvable:$true] %s27_s16 }
   0x4   :  { %s1671_s17 = smov 512   ;;  %s1672_s18 = smov 32  }
   0x5   :  { %22 = dma.hbm_to_vmem [thread:$0]  %s15_s11, 4096, %s17_s13, [#allocation5], %s1671_s17, %s1671_s17, %s1672_s18  }
   0x6   :  { %s1673_s19 = smov [#allocation7]  }
   0x7   :  { %s29_s20 = sshll.u32 %s1673_s19, 4  ;;  %s30_s20 = int_to_ptr.vmem [resolvable:$true] %s29_s20 }
   0x8   :  { %35 = dma.hbm_to_vmem [thread:$0]  %s28_s16, 8192, %s30_s20, [#allocation8], %s1671_s17, %s1671_s17, %s1672_s18  }
   0x9   :  { %1664 = dma.done.wait [#allocation5], 4096  }
   0xa   :  { %1665 = vsyncadd [#allocation5], 4294963200 }
   0xb   :  { %1666 = dma.done.wait [#allocation8], 8192  }
   0xc   :  { %1667 = vsyncadd [#allocation8], 4294959104  ;;  %v1699_v0 = vld [vmem:[#allocation7 + $0x1e0] sm:$0xff]  ;;  %v1701_v1 = vld [vmem:[#allocation7 + $0x1e8] sm:$0xff]  ;;  %v1674_v60 = vmov 0.0   ;;  %s1675_s0 = smov [#allocation9]  }
   0xd   :  { %2607 = vst [vmem:[#allocation13_spill] sm:$0xff] %v1699_v0  ;;  %v1703_v2 = vld [vmem:[#allocation7 + $0x1f0] sm:$0xff]  ;;  %120 = vmatpush.msra.mxu0 %v1699_v0  ;;  %140 = vmatpush.msra.mxu1 %v1701_v1  ;;  %v1707_v3 = vld [vmem:[#allocation7 + $0x1c0] sm:$0xff]  ;;  %v1709_v4 = vld [vmem:[#allocation7 + $0x1c8] sm:$0xff]  ;;  %s1352_s1 = sshll.u32 %s1675_s0, 4  ;;  %s1354_s23 = sshll.u32 %s2500_s2, 4  ;;  %s1353_s1 = int_to_ptr.vmem [resolvable:$true] %s1352_s1  ;;  %s1355_s23 = int_to_ptr.hbm [resolvable:$true] %s1354_s23 }
   0xe   :  { %v1711_v5 = vld [vmem:[#allocation7 + $0x1d0] sm:$0xff]  ;;  %160 = vmatpush.msra.mxu2 %v1703_v2  ;;  %v1714_v6 = vld [vmem:[#allocation7 + $0x1a0] sm:$0xff]  ;;  %v1716_v7 = vld [vmem:[#allocation7 + $0x1a8] sm:$0xff]  ;;  %s1676_s24 = smov 128   ;;  %s1677_s25 = smov 8  }
   0xf   :  { %121 = vmatpush.msra.mxu0 %v1707_v3  ;;  %141 = vmatpush.msra.mxu1 %v1709_v4  ;;  %v1720_v8 = vld [vmem:[#allocation7 + $0x1b0] sm:$0xff]  ;;  %v1723_v9 = vld [vmem:[#allocation7 + $0x180] sm:$0xff]  ;;  %v1725_v10 = vld [vmem:[#allocation7 + $0x188] sm:$0xff] }
  0x10   :  { %161 = vmatpush.msra.mxu2 %v1711_v5  ;;  %v1729_v11 = vld [vmem:[#allocation7 + $0x190] sm:$0xff]  ;;  %v1732_v12 = vld [vmem:[#allocation7 + $0x160] sm:$0xff]  ;;  %v1734_v13 = vld [vmem:[#allocation7 + $0x168] sm:$0xff] }
  0x11   :  { %122 = vmatpush.msra.mxu0 %v1714_v6  ;;  %142 = vmatpush.msra.mxu1 %v1716_v7  ;;  %v1738_v14 = vld [vmem:[#allocation7 + $0x170] sm:$0xff]  ;;  %v1741_v15 = vld [vmem:[#allocation7 + $0x140] sm:$0xff]  ;;  %v1743_v16 = vld [vmem:[#allocation7 + $0x148] sm:$0xff] }
  0x12   :  { %162 = vmatpush.msra.mxu2 %v1720_v8  ;;  %v1745_v17 = vld [vmem:[#allocation7 + $0x1f8] sm:$0xff]  ;;  %v1749_v18 = vld [vmem:[#allocation7 + $0x150] sm:$0xff]  ;;  %v1754_v20 = vld [vmem:[#allocation7 + $0x120] sm:$0xff] }
  0x13   :  { %123 = vmatpush.msra.mxu0 %v1723_v9  ;;  %143 = vmatpush.msra.mxu1 %v1725_v10  ;;  %v1751_v19 = vld [vmem:[#allocation7 + $0x1d8] sm:$0xff]  ;;  %v1756_v21 = vld [vmem:[#allocation7 + $0x128] sm:$0xff]  ;;  %v1761_v22 = vld [vmem:[#allocation7 + $0x130] sm:$0xff] }
  0x14   :  { %163 = vmatpush.msra.mxu2 %v1729_v11  ;;  %180 = vmatpush.msra.mxu3 %v1745_v17  ;;  %v1763_v23 = vld [vmem:[#allocation7 + $0x1b8] sm:$0xff]  ;;  %v1766_v24 = vld [vmem:[#allocation7 + $0x100] sm:$0xff]  ;;  %v1768_v25 = vld [vmem:[#allocation7 + $0x108] sm:$0xff] }
  0x15   :  { %124 = vmatpush.msra.mxu0 %v1732_v12  ;;  %144 = vmatpush.msra.mxu1 %v1734_v13  ;;  %v1773_v26 = vld [vmem:[#allocation7 + $0x110] sm:$0xff]  ;;  %v1775_v27 = vld [vmem:[#allocation7 + $0x198] sm:$0xff]  ;;  %v1778_v28 = vld [vmem:[#allocation7 + $0xe0] sm:$0xff] }
  0x16   :  { %164 = vmatpush.msra.mxu2 %v1738_v14  ;;  %181 = vmatpush.msra.mxu3 %v1751_v19  ;;  %v1780_v29 = vld [vmem:[#allocation7 + $0xe8] sm:$0xff]  ;;  %v1785_v30 = vld [vmem:[#allocation7 + $0xf0] sm:$0xff]  ;;  %v1787_v31 = vld [vmem:[#allocation7 + $0x178] sm:$0xff] }
  0x17   :  { %125 = vmatpush.msra.mxu0 %v1741_v15  ;;  %145 = vmatpush.msra.mxu1 %v1743_v16  ;;  %v1790_v32 = vld [vmem:[#allocation7 + $0xc0] sm:$0xff]  ;;  %v1792_v33 = vld [vmem:[#allocation7 + $0xc8] sm:$0xff]  ;;  %v1797_v34 = vld [vmem:[#allocation7 + $0xd0] sm:$0xff] }
  0x18   :  { %165 = vmatpush.msra.mxu2 %v1749_v18  ;;  %182 = vmatpush.msra.mxu3 %v1763_v23  ;;  %2608 = vst [vmem:[#allocation14_spill] sm:$0xff] %v1797_v34  ;;  %v1799_v35 = vld [vmem:[#allocation7 + $0x158] sm:$0xff]  ;;  %v1802_v36 = vld [vmem:[#allocation7 + $0xa0] sm:$0xff]  ;;  %v1804_v37 = vld [vmem:[#allocation7 + $0xa8] sm:$0xff] }
  0x19   :  { %126 = vmatpush.msra.mxu0 %v1754_v20  ;;  %146 = vmatpush.msra.mxu1 %v1756_v21  ;;  %2609 = vst [vmem:[#allocation15_spill] sm:$0xff] %v1802_v36  ;;  %v1809_v38 = vld [vmem:[#allocation7 + $0xb0] sm:$0xff]  ;;  %v1811_v39 = vld [vmem:[#allocation7 + $0x138] sm:$0xff]  ;;  %v1814_v40 = vld [vmem:[#allocation7 + $0x80] sm:$0xff] }
  0x1a   :  { %166 = vmatpush.msra.mxu2 %v1761_v22  ;;  %183 = vmatpush.msra.mxu3 %v1775_v27  ;;  %2610 = vst [vmem:[#allocation16_spill] sm:$0xff] %v1804_v37  ;;  %v1816_v41 = vld [vmem:[#allocation7 + $0x88] sm:$0xff]  ;;  %v1821_v42 = vld [vmem:[#allocation7 + $0x90] sm:$0xff]  ;;  %v1823_v43 = vld [vmem:[#allocation7 + $0x118] sm:$0xff] }
  0x1b   :  { %127 = vmatpush.msra.mxu0 %v1766_v24  ;;  %147 = vmatpush.msra.mxu1 %v1768_v25  ;;  %2611 = vst [vmem:[#allocation17_spill] sm:$0xff] %v1809_v38  ;;  %v1826_v44 = vld [vmem:[#allocation7 + $0x60] sm:$0xff]  ;;  %v1828_v45 = vld [vmem:[#allocation7 + $0x68] sm:$0xff]  ;;  %v1833_v46 = vld [vmem:[#allocation7 + $0x70] sm:$0xff] }
  0x1c   :  { %167 = vmatpush.msra.mxu2 %v1773_v26  ;;  %184 = vmatpush.msra.mxu3 %v1787_v31  ;;  %2612 = vst [vmem:[#allocation18_spill] sm:$0xff] %v1814_v40  ;;  %v1835_v47 = vld [vmem:[#allocation7 + $0xf8] sm:$0xff]  ;;  %v1838_v48 = vld [vmem:[#allocation7 + $0x40] sm:$0xff]  ;;  %v1840_v49 = vld [vmem:[#allocation7 + $0x48] sm:$0xff] }
  0x1d   :  { %128 = vmatpush.msra.mxu0 %v1778_v28  ;;  %148 = vmatpush.msra.mxu1 %v1780_v29  ;;  %2613 = vst [vmem:[#allocation19_spill] sm:$0xff] %v1816_v41  ;;  %v1845_v50 = vld [vmem:[#allocation7 + $0x50] sm:$0xff]  ;;  %v1847_v51 = vld [vmem:[#allocation7 + $0xd8] sm:$0xff]  ;;  %v1850_v52 = vld [vmem:[#allocation7 + $0x20] sm:$0xff] }
  0x1e   :  { %168 = vmatpush.msra.mxu2 %v1785_v30  ;;  %185 = vmatpush.msra.mxu3 %v1799_v35  ;;  %2614 = vst [vmem:[#allocation20_spill] sm:$0xff] %v1821_v42  ;;  %v1852_v53 = vld [vmem:[#allocation7 + $0x28] sm:$0xff]  ;;  %v1857_v54 = vld [vmem:[#allocation7 + $0x30] sm:$0xff]  ;;  %v1859_v55 = vld [vmem:[#allocation7 + $0xb8] sm:$0xff] }
  0x1f   :  { %129 = vmatpush.msra.mxu0 %v1790_v32  ;;  %149 = vmatpush.msra.mxu1 %v1792_v33  ;;  %2615 = vst [vmem:[#allocation21_spill] sm:$0xff] %v1826_v44  ;;  %v1862_v56 = vld [vmem:[#allocation7] sm:$0xff]  ;;  %v1864_v57 = vld [vmem:[#allocation7 + $0x8] sm:$0xff]  ;;  %v1869_v58 = vld [vmem:[#allocation7 + $0x10] sm:$0xff] }
  0x20   :  { %169 = vmatpush.msra.mxu2 %v1797_v34  ;;  %2616 = vst [vmem:[#allocation22_spill] sm:$0xff] %v1828_v45  ;;  %186 = vmatpush.msra.mxu3 %v1811_v39  ;;  %v1875_v59 = vld [vmem:[#allocation7 + $0x98] sm:$0xff] }
  0x21   :  { %130 = vmatpush.msra.mxu0 %v1802_v36  ;;  %150 = vmatpush.msra.mxu1 %v1804_v37  ;;  %2617 = vst [vmem:[#allocation23_spill] sm:$0xff] %v1833_v46  ;;  %v1878_v61 = vld [vmem:[#allocation7 + $0x78] sm:$0xff] }
  0x22   :  { %170 = vmatpush.msra.mxu2 %v1809_v38  ;;  %2618 = vst [vmem:[#allocation24_spill] sm:$0xff] %v1838_v48  ;;  %187 = vmatpush.msra.mxu3 %v1823_v43  ;;  %v1882_v62 = vld [vmem:[#allocation7 + $0x58] sm:$0xff] }
  0x23   :  { %131 = vmatpush.msra.mxu0 %v1814_v40  ;;  %151 = vmatpush.msra.mxu1 %v1816_v41  ;;  %2619 = vst [vmem:[#allocation25_spill] sm:$0xff] %v1840_v49  ;;  %v1888_v63 = vld [vmem:[#allocation7 + $0x38] sm:$0xff] }
  0x24   :  { %171 = vmatpush.msra.mxu2 %v1821_v42  ;;  %2620 = vst [vmem:[#allocation26_spill] sm:$0xff] %v1845_v50  ;;  %188 = vmatpush.msra.mxu3 %v1835_v47 }
  0x25   :  { %132 = vmatpush.msra.mxu0 %v1826_v44  ;;  %152 = vmatpush.msra.mxu1 %v1828_v45  ;;  %2621 = vst [vmem:[#allocation27_spill] sm:$0xff] %v1847_v51 }
  0x26   :  { %172 = vmatpush.msra.mxu2 %v1833_v46  ;;  %2622 = vst [vmem:[#allocation28_spill] sm:$0xff] %v1850_v52  ;;  %189 = vmatpush.msra.mxu3 %v1847_v51 }
  0x27   :  { %2623 = vst [vmem:[#allocation29_spill] sm:$0xff] %v1852_v53  ;;  %133 = vmatpush.msra.mxu0 %v1838_v48  ;;  %153 = vmatpush.msra.mxu1 %v1840_v49 }
  0x28   :  { %2624 = vst [vmem:[#allocation30_spill] sm:$0xff] %v1857_v54  ;;  %173 = vmatpush.msra.mxu2 %v1845_v50  ;;  %190 = vmatpush.msra.mxu3 %v1859_v55 }
  0x29   :  { %2625 = vst [vmem:[#allocation31_spill] sm:$0xff] %v1859_v55  ;;  %134 = vmatpush.msra.mxu0 %v1850_v52  ;;  %154 = vmatpush.msra.mxu1 %v1852_v53 }
  0x2a   :  { %2626 = vst [vmem:[#allocation32_spill] sm:$0xff] %v1862_v56  ;;  %174 = vmatpush.msra.mxu2 %v1857_v54  ;;  %191 = vmatpush.msra.mxu3 %v1875_v59 }
  0x2b   :  { %2627 = vst [vmem:[#allocation33_spill] sm:$0xff] %v1864_v57  ;;  %135 = vmatpush.msra.mxu0 %v1862_v56  ;;  %155 = vmatpush.msra.mxu1 %v1864_v57 }
  0x2c   :  { %2628 = vst [vmem:[#allocation34_spill] sm:$0xff] %v1869_v58  ;;  %175 = vmatpush.msra.mxu2 %v1869_v58  ;;  %136 = vmatmul.f32.vlgmr.msra.gmra.mxu0 %v1674_v60 }
  0x2d   :  { %2629 = vst [vmem:[#allocation35_spill] sm:$0xff] %v1875_v59  ;;  %156 = vmatmul.f32.vlgmr.msra.gmra.mxu1 %v1674_v60  ;;  %176 = vmatmul.f32.vlgmr.msra.gmra.mxu2 %v1674_v60 }
  0x2e   :  { %2630 = vst [vmem:[#allocation36_spill] sm:$0xff] %v1878_v61  ;;  %273 = vmatpush.msrb.mxu0 %v1699_v0  ;;  %293 = vmatpush.msrb.mxu1 %v1701_v1  ;;  %v1894_v0 = vld [vmem:[#allocation7 + $0x18] sm:$0xff] }
  0x2f   :  { %2631 = vst [vmem:[#allocation37_spill] sm:$0xff] %v1882_v62  ;;  %313 = vmatpush.msrb.mxu2 %v1703_v2  ;;  %192 = vmatpush.msra.mxu3 %v1878_v61 }
  0x30   :  { %274 = vmatpush.msrb.mxu0 %v1707_v3  ;;  %2632 = vst [vmem:[#allocation38_spill] sm:$0xff] %v1888_v63  ;;  %294 = vmatpush.msrb.mxu1 %v1709_v4 }
  0x31   :  { %314 = vmatpush.msrb.mxu2 %v1711_v5  ;;  %193 = vmatpush.msra.mxu3 %v1882_v62  ;;  %2633 = vst [vmem:[#allocation39_spill] sm:$0xff] %v1894_v0 }
  0x32   :  { %275 = vmatpush.msrb.mxu0 %v1714_v6  ;;  %295 = vmatpush.msrb.mxu1 %v1716_v7 }
  0x33   :  { %315 = vmatpush.msrb.mxu2 %v1720_v8  ;;  %194 = vmatpush.msra.mxu3 %v1888_v63 }
  0x34   :  { %276 = vmatpush.msrb.mxu0 %v1723_v9  ;;  %296 = vmatpush.msrb.mxu1 %v1725_v10 }
  0x35   :  { %316 = vmatpush.msrb.mxu2 %v1729_v11  ;;  %195 = vmatpush.msra.mxu3 %v1894_v0 }
  0x36   :  { %277 = vmatpush.msrb.mxu0 %v1732_v12  ;;  %196 = vmatmul.f32.vlgmr.msra.gmra.mxu3 %v1674_v60  ;;  %v2634_v60 = vld [vmem:[#allocation13_spill] sm:$0xff] }
  0x37   :  { %297 = vmatpush.msrb.mxu1 %v1734_v13  ;;  %333 = vmatpush.msrb.mxu3 %v1745_v17 }
  0x38   :  { %317 = vmatpush.msrb.mxu2 %v1738_v14  ;;  %278 = vmatpush.msrb.mxu0 %v1741_v15 }
  0x39   :  { %298 = vmatpush.msrb.mxu1 %v1743_v16  ;;  %334 = vmatpush.msrb.mxu3 %v1751_v19 }
  0x3a   :  { %318 = vmatpush.msrb.mxu2 %v1749_v18  ;;  %279 = vmatpush.msrb.mxu0 %v1754_v20 }
  0x3b   :  { %299 = vmatpush.msrb.mxu1 %v1756_v21  ;;  %335 = vmatpush.msrb.mxu3 %v1763_v23 }
  0x3c   :  { %319 = vmatpush.msrb.mxu2 %v1761_v22  ;;  %280 = vmatpush.msrb.mxu0 %v1766_v24 }
  0x3d   :  { %300 = vmatpush.msrb.mxu1 %v1768_v25  ;;  %336 = vmatpush.msrb.mxu3 %v1775_v27 }
  0x3e   :  { %320 = vmatpush.msrb.mxu2 %v1773_v26  ;;  %281 = vmatpush.msrb.mxu0 %v1778_v28 }
  0x3f   :  { %301 = vmatpush.msrb.mxu1 %v1780_v29  ;;  %337 = vmatpush.msrb.mxu3 %v1787_v31 }
  0x40   :  { %321 = vmatpush.msrb.mxu2 %v1785_v30  ;;  %282 = vmatpush.msrb.mxu0 %v1790_v32 }
  0x41   :  { %302 = vmatpush.msrb.mxu1 %v1792_v33  ;;  %338 = vmatpush.msrb.mxu3 %v1799_v35 }
  0x42   :  { %322 = vmatpush.msrb.mxu2 %v1797_v34  ;;  %283 = vmatpush.msrb.mxu0 %v1802_v36 }
  0x43   :  { %303 = vmatpush.msrb.mxu1 %v1804_v37  ;;  %339 = vmatpush.msrb.mxu3 %v1811_v39 }
  0x44   :  { %323 = vmatpush.msrb.mxu2 %v1809_v38  ;;  %284 = vmatpush.msrb.mxu0 %v1814_v40 }
  0x45   :  { %304 = vmatpush.msrb.mxu1 %v1816_v41  ;;  %340 = vmatpush.msrb.mxu3 %v1823_v43 }
  0x46   :  { %324 = vmatpush.msrb.mxu2 %v1821_v42  ;;  %285 = vmatpush.msrb.mxu0 %v1826_v44 }
  0x47   :  { %305 = vmatpush.msrb.mxu1 %v1828_v45  ;;  %341 = vmatpush.msrb.mxu3 %v1835_v47 }
  0x48   :  { %325 = vmatpush.msrb.mxu2 %v1833_v46  ;;  %286 = vmatpush.msrb.mxu0 %v1838_v48 }
  0x49   :  { %306 = vmatpush.msrb.mxu1 %v1840_v49  ;;  %342 = vmatpush.msrb.mxu3 %v1847_v51 }
  0x4a   :  { %326 = vmatpush.msrb.mxu2 %v1845_v50  ;;  %287 = vmatpush.msrb.mxu0 %v1850_v52 }
  0x4b   :  { %307 = vmatpush.msrb.mxu1 %v1852_v53  ;;  %343 = vmatpush.msrb.mxu3 %v1859_v55 }
  0x4c   :  { %327 = vmatpush.msrb.mxu2 %v1857_v54  ;;  %288 = vmatpush.msrb.mxu0 %v1862_v56 }
  0x4d   :  { %308 = vmatpush.msrb.mxu1 %v1864_v57  ;;  %344 = vmatpush.msrb.mxu3 %v1875_v59 }
  0x4e   :  { %328 = vmatpush.msrb.mxu2 %v1869_v58  ;;  %427 = vmatpush.msra.mxu0 %v2634_v60 }
  0x4f   :  { %447 = vmatpush.msra.mxu1 %v1701_v1  ;;  %345 = vmatpush.msrb.mxu3 %v1878_v61 }
  0x50   :  { %467 = vmatpush.msra.mxu2 %v1703_v2  ;;  %428 = vmatpush.msra.mxu0 %v1707_v3 }
  0x51   :  { %448 = vmatpush.msra.mxu1 %v1709_v4  ;;  %346 = vmatpush.msrb.mxu3 %v1882_v62 }
  0x52   :  { %468 = vmatpush.msra.mxu2 %v1711_v5  ;;  %429 = vmatpush.msra.mxu0 %v1714_v6 }
  0x53   :  { %449 = vmatpush.msra.mxu1 %v1716_v7  ;;  %347 = vmatpush.msrb.mxu3 %v1888_v63 }
  0x54   :  { %469 = vmatpush.msra.mxu2 %v1720_v8  ;;  %430 = vmatpush.msra.mxu0 %v1723_v9 }
  0x55   :  { %450 = vmatpush.msra.mxu1 %v1725_v10  ;;  %348 = vmatpush.msrb.mxu3 %v1894_v0 }
  0x56   :  { %470 = vmatpush.msra.mxu2 %v1729_v11  ;;  %431 = vmatpush.msra.mxu0 %v1732_v12 }
  0x57   :  { %487 = vmatpush.msra.mxu3 %v1745_v17  ;;  %451 = vmatpush.msra.mxu1 %v1734_v13 }
  0x58   :  { %471 = vmatpush.msra.mxu2 %v1738_v14  ;;  %432 = vmatpush.msra.mxu0 %v1741_v15 }
  0x59   :  { %488 = vmatpush.msra.mxu3 %v1751_v19  ;;  %452 = vmatpush.msra.mxu1 %v1743_v16 }
  0x5a   :  { %472 = vmatpush.msra.mxu2 %v1749_v18  ;;  %433 = vmatpush.msra.mxu0 %v1754_v20 }
  0x5b   :  { %489 = vmatpush.msra.mxu3 %v1763_v23  ;;  %453 = vmatpush.msra.mxu1 %v1756_v21 }
  0x5c   :  { %473 = vmatpush.msra.mxu2 %v1761_v22  ;;  %434 = vmatpush.msra.mxu0 %v1766_v24 }
  0x5d   :  { %490 = vmatpush.msra.mxu3 %v1775_v27  ;;  %454 = vmatpush.msra.mxu1 %v1768_v25 }
  0x5e   :  { %474 = vmatpush.msra.mxu2 %v1773_v26  ;;  %435 = vmatpush.msra.mxu0 %v1778_v28 }
  0x5f   :  { %491 = vmatpush.msra.mxu3 %v1787_v31  ;;  %455 = vmatpush.msra.mxu1 %v1780_v29 }
  0x60   :  { %475 = vmatpush.msra.mxu2 %v1785_v30  ;;  %436 = vmatpush.msra.mxu0 %v1790_v32 }
  0x61   :  { %492 = vmatpush.msra.mxu3 %v1799_v35  ;;  %456 = vmatpush.msra.mxu1 %v1792_v33 }
  0x62   :  { %476 = vmatpush.msra.mxu2 %v1797_v34  ;;  %437 = vmatpush.msra.mxu0 %v1802_v36 }
  0x63   :  { %493 = vmatpush.msra.mxu3 %v1811_v39  ;;  %457 = vmatpush.msra.mxu1 %v1804_v37 }
  0x64   :  { %477 = vmatpush.msra.mxu2 %v1809_v38  ;;  %438 = vmatpush.msra.mxu0 %v1814_v40 }
  0x65   :  { %494 = vmatpush.msra.mxu3 %v1823_v43  ;;  %458 = vmatpush.msra.mxu1 %v1816_v41 }
  0x66   :  { %478 = vmatpush.msra.mxu2 %v1821_v42  ;;  %439 = vmatpush.msra.mxu0 %v1826_v44 }
  0x67   :  { %495 = vmatpush.msra.mxu3 %v1835_v47  ;;  %459 = vmatpush.msra.mxu1 %v1828_v45 }
  0x68   :  { %479 = vmatpush.msra.mxu2 %v1833_v46  ;;  %440 = vmatpush.msra.mxu0 %v1838_v48 }
  0x69   :  { %496 = vmatpush.msra.mxu3 %v1847_v51  ;;  %460 = vmatpush.msra.mxu1 %v1840_v49 }
  0x6a   :  { %480 = vmatpush.msra.mxu2 %v1845_v50  ;;  %441 = vmatpush.msra.mxu0 %v1850_v52  ;;  %v116_v52 = vld [vmem:[#allocation4] sm:$0xff] }
  0x6b   :  { %497 = vmatpush.msra.mxu3 %v1859_v55  ;;  %461 = vmatpush.msra.mxu1 %v1852_v53  ;;  %v117_v53 = vld [vmem:[#allocation4 + $0x8] sm:$0xff] }
  0x6c   :  { %481 = vmatpush.msra.mxu2 %v1857_v54  ;;  %442 = vmatpush.msra.mxu0 %v1862_v56 }
  0x6d   :  { %498 = vmatpush.msra.mxu3 %v1875_v59  ;;  %462 = vmatpush.msra.mxu1 %v1864_v57  ;;  %v118_v57 = vld [vmem:[#allocation4 + $0x10] sm:$0xff] }
  0x6e   :  { %482 = vmatpush.msra.mxu2 %v1869_v58 }
  0x6f   :  { %499 = vmatpush.msra.mxu3 %v1878_v61 }
  0x71   :  { %500 = vmatpush.msra.mxu3 %v1882_v62 }
  0x73   :  { %501 = vmatpush.msra.mxu3 %v1888_v63 }
  0x75   :  { %502 = vmatpush.msra.mxu3 %v1894_v0  ;;  %v119_v0 = vld [vmem:[#allocation4 + $0x18] sm:$0xff] }
  0xa9   :  { %v137_v50 = vpop.f32.mrf.mxu0 }
  0xaa   :  { %v200_v54 = vadd.f32 %v137_v50, %v116_v52  ;;  %v157_v49 = vpop.f32.mrf.mxu1 }
  0xab   :  { %v201_v48 = vadd.f32 %v157_v49, %v117_v53 }
  0xac   :  { %v1368_v46 = vmul.f32 -1.442695, %v200_v54 }
  0xad   :  { %v1369_v56 = vmul.f32 -1.442695, %v201_v48 }
  0xae   :  { %1400 = vpow2.f32 %v1368_v46 }
  0xaf   :  { %1402 = vpow2.f32 %v1369_v56 }
  0xb0   :  { %v177_v58 = vpop.f32.mrf.mxu2 }
  0xb1   :  { %v202_v45 = vadd.f32 %v177_v58, %v118_v57 }
  0xb3   :  { %v1370_v61 = vmul.f32 -1.442695, %v202_v45 }
  0xb4   :  { %v1401_v44 = vpop.eup %1400 }
  0xb5   :  { %v1403_v62 = vpop.eup %1402  ;;  %v213_v59 = vadd.f32 1.0, %v1401_v44  ;;  %1404 = vpow2.f32 %v1370_v61 }
  0xb6   :  { %v214_v63 = vadd.f32 1.0, %v1403_v62 }
  0xb7   :  { %1406 = vrcp.f32 %v213_v59  ;;  %v227_v57 = vand.u32 2147483648, %v213_v59  ;;  %v225_v61 = vand.u32 2147483647, %v213_v59  ;;  %vm221_vm2 = vweird.f32 %v213_v59 }
  0xb8   :  { %1408 = vrcp.f32 %v214_v63  ;;  %v242_v58 = vand.u32 2147483648, %v214_v63  ;;  %v240_v41 = vand.u32 2147483647, %v214_v63  ;;  %vm236_vm3 = vweird.f32 %v214_v63 }
  0xb9   :  { %v197_v42 = vpop.f32.mrf.mxu3  ;;  %vm226_vm5 = vcmp.eq.f32.partialorder %v225_v61, 8.507059e+37  ;;  %v2642_v61 = vld [vmem:[#allocation19_spill] sm:$0xff] }
  0xba   :  { %v203_v52 = vadd.f32 %v197_v42, %v119_v0  ;;  %vm241_vm7 = vcmp.eq.f32.partialorder %v240_v41, 8.507059e+37 }
  0xbb   :  { %v1405_v50 = vpop.eup %1404 }
  0xbc   :  { %v215_v49 = vadd.f32 1.0, %v1405_v50  ;;  %v228_v50 = vor.u32 1.1754944e-38, %v227_v57 }
  0xbd   :  { %v1407_v53 = vpop.eup %1406 }
  0xbe   :  { %v1409_v48 = vpop.eup %1408  ;;  %v217_v46 = vmul.f32 %v1407_v53, %v213_v59  ;;  %1410 = vrcp.f32 %v215_v49  ;;  %vm222_vm0 = vweird.f32 %v1407_v53  ;;  %vm251_vm9 = vweird.f32 %v215_v49 }
  0xbf   :  { %v232_v54 = vmul.f32 %v1409_v48, %v214_v63  ;;  %1412 = vtanh.f32 %v203_v52  ;;  %vm237_vm1 = vweird.f32 %v1409_v48  ;;  %vm223_vm4 = vmor %vm221_vm2, %vm222_vm0  ;;  %v243_v52 = vor.u32 1.1754944e-38, %v242_v58 }
  0xc0   :  { %v218_v56 = vsub.f32 1.0, %v217_v46  ;;  %vm238_vm6 = vmor %vm236_vm3, %vm237_vm1  ;;  %v257_v63 = vand.u32 2147483648, %v215_v49  ;;  %v255_v57 = vand.u32 2147483647, %v215_v49 }
  0xc1   :  { %v233_v45 = vsub.f32 1.0, %v232_v54 }
  0xc2   :  { %v219_v44 = vmul.f32 %v1407_v53, %v218_v56  ;;  %vm256_vm11 = vcmp.eq.f32.partialorder %v255_v57, 8.507059e+37  ;;  %v2654_v57 = vld [vmem:[#allocation29_spill] sm:$0xff] }
  0xc3   :  { %v234_v62 = vmul.f32 %v1409_v48, %v233_v45 }
  0xc4   :  { %v1411_v40 = vpop.eup %1410  ;;  %v220_v55 = vadd.f32 %v1407_v53, %v219_v44 }
  0xc5   :  { %v1413_v0 = vpop.eup %1412  ;;  %v247_v42 = vmul.f32 %v1411_v40, %v215_v49  ;;  %v235_v38 = vadd.f32 %v1409_v48, %v234_v62  ;;  %vm252_vm8 = vweird.f32 %v1411_v40  ;;  %v2640_v49 = vld [vmem:[#allocation31_spill] sm:$0xff]  ;;  %v2643_v62 = vld [vmem:[#allocation20_spill] sm:$0xff] }
  0xc6   :  { %v224_v46 = vsel %vm223_vm4, %v1407_v53, %v220_v55  ;;  %vm253_vm10 = vmor %vm251_vm9, %vm252_vm8  ;;  %v258_v53 = vor.u32 1.1754944e-38, %v257_v63  ;;  %v2653_v63 = vld [vmem:[#allocation28_spill] sm:$0xff] }
  0xc7   :  { %v248_v54 = vsub.f32 1.0, %v247_v42  ;;  %v229_v56 = vsel %vm226_vm5, %v228_v50, %v224_v46  ;;  %v239_v37 = vsel %vm238_vm6, %v1409_v48, %v235_v38  ;;  %v2641_v48 = vld [vmem:[#allocation18_spill] sm:$0xff]  ;;  %v2645_v42 = vld [vmem:[#allocation21_spill] sm:$0xff]  ;;  %v2648_v46 = vld [vmem:[#allocation36_spill] sm:$0xff] }
  0xc8   :  { %v244_v45 = vsel %vm241_vm7, %v243_v52, %v239_v37  ;;  %v263_v36 = vmul.f32 %v1413_v0, %v229_v56  ;;  %v2637_v37 = vld [vmem:[#allocation15_spill] sm:$0xff]  ;;  %v2646_v50 = vld [vmem:[#allocation22_spill] sm:$0xff]  ;;  %v2650_v56 = vld [vmem:[#allocation25_spill] sm:$0xff] }
  0xc9   :  { %v249_v51 = vmul.f32 %v1411_v40, %v248_v54  ;;  %v262_v34 = vmul.f32 0.0, %v244_v45  ;;  %v2644_v0 = vld [vmem:[#allocation35_spill] sm:$0xff]  ;;  %v2649_v54 = vld [vmem:[#allocation24_spill] sm:$0xff]  ;;  %v2651_v45 = vld [vmem:[#allocation26_spill] sm:$0xff] }
  0xca   :  { %v2647_v52 = vld [vmem:[#allocation23_spill] sm:$0xff] }
  0xcb   :  { %v2019_v44 = vadd.f32 %v263_v36, %v262_v34  ;;  %v250_v59 = vadd.f32 %v1411_v40, %v249_v51  ;;  %v2635_v34 = vld [vmem:[#allocation14_spill] sm:$0xff]  ;;  %v2636_v36 = vld [vmem:[#allocation27_spill] sm:$0xff]  ;;  %v2639_v51 = vld [vmem:[#allocation17_spill] sm:$0xff] }
  0xcd   :  { %1414 = vtanh.f32 %v2019_v44  ;;  %v254_v55 = vsel %vm253_vm10, %v1411_v40, %v250_v59  ;;  %v2638_v40 = vld [vmem:[#allocation16_spill] sm:$0xff]  ;;  %v2652_v59 = vld [vmem:[#allocation37_spill] sm:$0xff] }
  0xce   :  { %v259_v38 = vsel %vm256_vm11, %v258_v53, %v254_v55  ;;  %v2655_v55 = vld [vmem:[#allocation30_spill] sm:$0xff] }
  0xcf   :  { %v2656_v53 = vld [vmem:[#allocation38_spill] sm:$0xff] }
  0xd3   :  { %v1415_v58 = vpop.eup %1414 }
  0xd4   :  { %v266_v41 = vmul.f32 %v1415_v58, %v259_v38  ;;  %v2657_v58 = vld [vmem:[#allocation32_spill] sm:$0xff]  ;;  %v2658_v38 = vld [vmem:[#allocation33_spill] sm:$0xff] }
  0xd6   :  { %267 = vst [vmem:[#allocation9] sm:$0xff] %v266_v41  ;;  %289 = vmatmul.f32.vlgmr.msrb.gmra.mxu0 %v266_v41  ;;  %309 = vmatmul.f32.vlgmr.msrb.gmra.mxu1 %v266_v41 }
  0xd7   :  { %329 = vmatmul.f32.vlgmr.msrb.gmra.mxu2 %v266_v41  ;;  %349 = vmatmul.f32.vlgmr.msrb.gmra.mxu3 %v266_v41  ;;  %v2659_v41 = vld [vmem:[#allocation34_spill] sm:$0xff] }
  0xd8   :  { %581 = vmatpush.msrb.mxu0 %v2634_v60  ;;  %601 = vmatpush.msrb.mxu1 %v1701_v1 }
  0xd9   :  { %621 = vmatpush.msrb.mxu2 %v1703_v2  ;;  %641 = vmatpush.msrb.mxu3 %v1745_v17 }
  0xda   :  { %582 = vmatpush.msrb.mxu0 %v1707_v3  ;;  %602 = vmatpush.msrb.mxu1 %v1709_v4 }
  0xdb   :  { %622 = vmatpush.msrb.mxu2 %v1711_v5  ;;  %642 = vmatpush.msrb.mxu3 %v1751_v19 }
  0xdc   :  { %583 = vmatpush.msrb.mxu0 %v1714_v6  ;;  %603 = vmatpush.msrb.mxu1 %v1716_v7 }
  0xdd   :  { %623 = vmatpush.msrb.mxu2 %v1720_v8  ;;  %643 = vmatpush.msrb.mxu3 %v1763_v23 }
  0xde   :  { %584 = vmatpush.msrb.mxu0 %v1723_v9  ;;  %604 = vmatpush.msrb.mxu1 %v1725_v10 }
  0xdf   :  { %624 = vmatpush.msrb.mxu2 %v1729_v11  ;;  %644 = vmatpush.msrb.mxu3 %v1775_v27 }
  0xe0   :  { %585 = vmatpush.msrb.mxu0 %v1732_v12  ;;  %605 = vmatpush.msrb.mxu1 %v1734_v13 }
  0xe1   :  { %625 = vmatpush.msrb.mxu2 %v1738_v14  ;;  %645 = vmatpush.msrb.mxu3 %v1787_v31 }
  0xe2   :  { %586 = vmatpush.msrb.mxu0 %v1741_v15  ;;  %606 = vmatpush.msrb.mxu1 %v1743_v16 }
  0xe3   :  { %626 = vmatpush.msrb.mxu2 %v1749_v18  ;;  %646 = vmatpush.msrb.mxu3 %v1799_v35 }
  0xe4   :  { %587 = vmatpush.msrb.mxu0 %v1754_v20  ;;  %607 = vmatpush.msrb.mxu1 %v1756_v21 }
  0xe5   :  { %627 = vmatpush.msrb.mxu2 %v1761_v22  ;;  %647 = vmatpush.msrb.mxu3 %v1811_v39 }
  0xe6   :  { %588 = vmatpush.msrb.mxu0 %v1766_v24  ;;  %608 = vmatpush.msrb.mxu1 %v1768_v25 }
  0xe7   :  { %628 = vmatpush.msrb.mxu2 %v1773_v26  ;;  %648 = vmatpush.msrb.mxu3 %v1823_v43 }
  0xe8   :  { %589 = vmatpush.msrb.mxu0 %v1778_v28  ;;  %609 = vmatpush.msrb.mxu1 %v1780_v29 }
  0xe9   :  { %629 = vmatpush.msrb.mxu2 %v1785_v30  ;;  %649 = vmatpush.msrb.mxu3 %v1835_v47 }
  0xea   :  { %590 = vmatpush.msrb.mxu0 %v1790_v32  ;;  %610 = vmatpush.msrb.mxu1 %v1792_v33 }
  0xeb   :  { %630 = vmatpush.msrb.mxu2 %v2635_v34  ;;  %650 = vmatpush.msrb.mxu3 %v2636_v36 }
  0xec   :  { %591 = vmatpush.msrb.mxu0 %v2637_v37  ;;  %611 = vmatpush.msrb.mxu1 %v2638_v40 }
  0xed   :  { %631 = vmatpush.msrb.mxu2 %v2639_v51  ;;  %651 = vmatpush.msrb.mxu3 %v2640_v49 }
  0xee   :  { %592 = vmatpush.msrb.mxu0 %v2641_v48  ;;  %612 = vmatpush.msrb.mxu1 %v2642_v61 }
  0xef   :  { %632 = vmatpush.msrb.mxu2 %v2643_v62  ;;  %652 = vmatpush.msrb.mxu3 %v2644_v0 }
  0xf0   :  { %593 = vmatpush.msrb.mxu0 %v2645_v42  ;;  %613 = vmatpush.msrb.mxu1 %v2646_v50 }
  0xf1   :  { %633 = vmatpush.msrb.mxu2 %v2647_v52  ;;  %653 = vmatpush.msrb.mxu3 %v2648_v46 }
  0xf2   :  { %594 = vmatpush.msrb.mxu0 %v2649_v54  ;;  %614 = vmatpush.msrb.mxu1 %v2650_v56  ;;  %v2660_v54 = vld [vmem:[#allocation39_spill] sm:$0xff]  ;;  %v269_v56 = vld [vmem:[#allocation4 + $0x20] sm:$0xff] }
  0xf3   :  { %634 = vmatpush.msrb.mxu2 %v2651_v45  ;;  %654 = vmatpush.msrb.mxu3 %v2652_v59  ;;  %v270_v45 = vld [vmem:[#allocation4 + $0x28] sm:$0xff] }
  0xf4   :  { %595 = vmatpush.msrb.mxu0 %v2653_v63  ;;  %615 = vmatpush.msrb.mxu1 %v2654_v57 }
  0xf5   :  { %635 = vmatpush.msrb.mxu2 %v2655_v55  ;;  %655 = vmatpush.msrb.mxu3 %v2656_v53  ;;  %v271_v55 = vld [vmem:[#allocation4 + $0x30] sm:$0xff] }
  0xf6   :  { %596 = vmatpush.msrb.mxu0 %v2657_v58  ;;  %616 = vmatpush.msrb.mxu1 %v2658_v38 }
  0xf7   :  { %636 = vmatpush.msrb.mxu2 %v2659_v41  ;;  %656 = vmatpush.msrb.mxu3 %v2660_v54  ;;  %v272_v54 = vld [vmem:[#allocation4 + $0x38] sm:$0xff] }
 0x153   :  { %v290_v46 = vpop.f32.mrf.mxu0  ;;  %v310_v59 = vpop.f32.mrf.mxu1 }
 0x154   :  { %v353_v52 = vadd.f32 %v290_v46, %v269_v56  ;;  %v354_v63 = vadd.f32 %v310_v59, %v270_v45 }
 0x156   :  { %v1371_v50 = vmul.f32 -1.442695, %v353_v52  ;;  %v1372_v57 = vmul.f32 -1.442695, %v354_v63 }
 0x158   :  { %1416 = vpow2.f32 %v1371_v50 }
 0x159   :  { %1418 = vpow2.f32 %v1372_v57 }
 0x15a   :  { %v330_v53 = vpop.f32.mrf.mxu2  ;;  %v350_v61 = vpop.f32.mrf.mxu3 }
 0x15b   :  { %v355_v42 = vadd.f32 %v330_v53, %v271_v55  ;;  %v356_v52 = vadd.f32 %v350_v61, %v272_v54 }
 0x15d   :  { %v1373_v58 = vmul.f32 -1.442695, %v355_v42 }
 0x15e   :  { %v1417_v0 = vpop.eup %1416 }
 0x15f   :  { %v1419_v38 = vpop.eup %1418  ;;  %v366_v62 = vadd.f32 1.0, %v1417_v0  ;;  %1420 = vpow2.f32 %v1373_v58 }
 0x160   :  { %v367_v41 = vadd.f32 1.0, %v1419_v38 }
 0x161   :  { %1422 = vrcp.f32 %v366_v62  ;;  %v380_v42 = vand.u32 2147483648, %v366_v62  ;;  %v378_v53 = vand.u32 2147483647, %v366_v62  ;;  %vm374_vm14 = vweird.f32 %v366_v62 }
 0x162   :  { %1424 = vrcp.f32 %v367_v41  ;;  %v395_v55 = vand.u32 2147483648, %v367_v41  ;;  %v393_v38 = vand.u32 2147483647, %v367_v41  ;;  %vm389_vm15 = vweird.f32 %v367_v41 }
 0x163   :  { %v381_v61 = vor.u32 1.1754944e-38, %v380_v42  ;;  %vm379_vm2 = vcmp.eq.f32.partialorder %v378_v53, 8.507059e+37 }
 0x164   :  { %vm394_vm3 = vcmp.eq.f32.partialorder %v393_v38, 8.507059e+37 }
 0x165   :  { %v1421_v48 = vpop.eup %1420 }
 0x166   :  { %v368_v46 = vadd.f32 1.0, %v1421_v48 }
 0x167   :  { %v1423_v56 = vpop.eup %1422 }
 0x168   :  { %v1425_v45 = vpop.eup %1424  ;;  %v370_v50 = vmul.f32 %v1423_v56, %v366_v62  ;;  %1426 = vrcp.f32 %v368_v46  ;;  %vm375_vm12 = vweird.f32 %v1423_v56  ;;  %v410_v42 = vand.u32 2147483648, %v368_v46 }
 0x169   :  { %v385_v59 = vmul.f32 %v1425_v45, %v367_v41  ;;  %1428 = vtanh.f32 %v356_v52  ;;  %vm390_vm13 = vweird.f32 %v1425_v45  ;;  %vm376_vm0 = vmor %vm374_vm14, %vm375_vm12  ;;  %vm404_vm5 = vweird.f32 %v368_v46 }
 0x16a   :  { %v371_v63 = vsub.f32 1.0, %v370_v50  ;;  %vm391_vm1 = vmor %vm389_vm15, %vm390_vm13  ;;  %v396_v50 = vor.u32 1.1754944e-38, %v395_v55  ;;  %v411_v55 = vor.u32 1.1754944e-38, %v410_v42 }
 0x16b   :  { %v386_v57 = vsub.f32 1.0, %v385_v59 }
 0x16c   :  { %v372_v0 = vmul.f32 %v1423_v56, %v371_v63 }
 0x16d   :  { %v387_v58 = vmul.f32 %v1425_v45, %v386_v57 }
 0x16e   :  { %v1427_v49 = vpop.eup %1426  ;;  %v373_v51 = vadd.f32 %v1423_v56, %v372_v0 }
 0x16f   :  { %v400_v48 = vmul.f32 %v1427_v49, %v368_v46  ;;  %v388_v54 = vadd.f32 %v1425_v45, %v387_v58  ;;  %v1429_v52 = vpop.eup %1428  ;;  %vm405_vm4 = vweird.f32 %v1427_v49 }
 0x170   :  { %v377_v59 = vsel %vm376_vm0, %v1423_v56, %v373_v51  ;;  %v408_v51 = vand.u32 2147483647, %v368_v46  ;;  %vm406_vm6 = vmor %vm404_vm5, %vm405_vm4 }
 0x171   :  { %v401_v40 = vsub.f32 1.0, %v400_v48  ;;  %v382_v63 = vsel %vm379_vm2, %v381_v61, %v377_v59  ;;  %v392_v37 = vsel %vm391_vm1, %v1425_v45, %v388_v54 }
 0x172   :  { %v397_v57 = vsel %vm394_vm3, %v396_v50, %v392_v37  ;;  %v416_v36 = vmul.f32 %v1429_v52, %v382_v63  ;;  %vm409_vm7 = vcmp.eq.f32.partialorder %v408_v51, 8.507059e+37 }
 0x173   :  { %v402_v34 = vmul.f32 %v1427_v49, %v401_v40  ;;  %v415_v0 = vmul.f32 %v397_v57, %v2019_v44 }
 0x175   :  { %v2087_v62 = vadd.f32 %v416_v36, %v415_v0  ;;  %v403_v41 = vadd.f32 %v1427_v49, %v402_v34 }
 0x177   :  { %1430 = vtanh.f32 %v2087_v62  ;;  %v407_v56 = vsel %vm406_vm6, %v1427_v49, %v403_v41  ;;  %v426_v49 = vld [vmem:[#allocation4 + $0x58] sm:$0xff] }
 0x178   :  { %v412_v53 = vsel %vm409_vm7, %v411_v55, %v407_v56 }
 0x17d   :  { %v1431_v45 = vpop.eup %1430 }
 0x17e   :  { %v419_v37 = vmul.f32 %v1431_v45, %v412_v53 }
 0x180   :  { %421 = vst [vmem:[#allocation9 + $0x8] sm:$0xff] %v419_v37  ;;  %443 = vmatmul.f32.vlgmr.msra.gmra.mxu0 %v419_v37  ;;  %463 = vmatmul.f32.vlgmr.msra.gmra.mxu1 %v419_v37 }
 0x181   :  { %483 = vmatmul.f32.vlgmr.msra.gmra.mxu2 %v419_v37  ;;  %503 = vmatmul.f32.vlgmr.msra.gmra.mxu3 %v419_v37 }
 0x182   :  { %735 = vmatpush.msra.mxu0 %v2634_v60  ;;  %755 = vmatpush.msra.mxu1 %v1701_v1  ;;  %v2661_v1 = vld [vmem:[#allocation14_spill] sm:$0xff] }
 0x183   :  { %775 = vmatpush.msra.mxu2 %v1703_v2  ;;  %795 = vmatpush.msra.mxu3 %v1745_v17  ;;  %v2662_v2 = vld [vmem:[#allocation27_spill] sm:$0xff]  ;;  %v2677_v17 = vld [vmem:[#allocation26_spill] sm:$0xff] }
 0x184   :  { %736 = vmatpush.msra.mxu0 %v1707_v3  ;;  %756 = vmatpush.msra.mxu1 %v1709_v4  ;;  %v2663_v3 = vld [vmem:[#allocation15_spill] sm:$0xff]  ;;  %v2664_v4 = vld [vmem:[#allocation16_spill] sm:$0xff] }
 0x185   :  { %776 = vmatpush.msra.mxu2 %v1711_v5  ;;  %796 = vmatpush.msra.mxu3 %v1751_v19  ;;  %v2665_v5 = vld [vmem:[#allocation17_spill] sm:$0xff]  ;;  %v2679_v19 = vld [vmem:[#allocation28_spill] sm:$0xff] }
 0x186   :  { %737 = vmatpush.msra.mxu0 %v1714_v6  ;;  %757 = vmatpush.msra.mxu1 %v1716_v7  ;;  %v2666_v6 = vld [vmem:[#allocation31_spill] sm:$0xff]  ;;  %v2667_v7 = vld [vmem:[#allocation18_spill] sm:$0xff] }
 0x187   :  { %777 = vmatpush.msra.mxu2 %v1720_v8  ;;  %797 = vmatpush.msra.mxu3 %v1763_v23  ;;  %v2668_v8 = vld [vmem:[#allocation19_spill] sm:$0xff]  ;;  %v2683_v23 = vld [vmem:[#allocation32_spill] sm:$0xff] }
 0x188   :  { %738 = vmatpush.msra.mxu0 %v1723_v9  ;;  %758 = vmatpush.msra.mxu1 %v1725_v10  ;;  %v2669_v9 = vld [vmem:[#allocation20_spill] sm:$0xff]  ;;  %v2670_v10 = vld [vmem:[#allocation35_spill] sm:$0xff] }
 0x189   :  { %778 = vmatpush.msra.mxu2 %v1729_v11  ;;  %798 = vmatpush.msra.mxu3 %v1775_v27  ;;  %v2671_v11 = vld [vmem:[#allocation21_spill] sm:$0xff] }
 0x18a   :  { %739 = vmatpush.msra.mxu0 %v1732_v12  ;;  %759 = vmatpush.msra.mxu1 %v1734_v13  ;;  %v2672_v12 = vld [vmem:[#allocation22_spill] sm:$0xff]  ;;  %v2673_v13 = vld [vmem:[#allocation23_spill] sm:$0xff]  ;;  %v423_v27 = vld [vmem:[#allocation4 + $0x40] sm:$0xff] }
 0x18b   :  { %779 = vmatpush.msra.mxu2 %v1738_v14  ;;  %799 = vmatpush.msra.mxu3 %v1787_v31  ;;  %v2674_v14 = vld [vmem:[#allocation36_spill] sm:$0xff] }
 0x18c   :  { %740 = vmatpush.msra.mxu0 %v1741_v15  ;;  %760 = vmatpush.msra.mxu1 %v1743_v16  ;;  %v2675_v15 = vld [vmem:[#allocation24_spill] sm:$0xff]  ;;  %v2676_v16 = vld [vmem:[#allocation25_spill] sm:$0xff] }
 0x18d   :  { %780 = vmatpush.msra.mxu2 %v1749_v18  ;;  %800 = vmatpush.msra.mxu3 %v1799_v35  ;;  %v2678_v18 = vld [vmem:[#allocation37_spill] sm:$0xff] }
 0x18e   :  { %741 = vmatpush.msra.mxu0 %v1754_v20  ;;  %761 = vmatpush.msra.mxu1 %v1756_v21  ;;  %v2680_v20 = vld [vmem:[#allocation29_spill] sm:$0xff]  ;;  %v2681_v21 = vld [vmem:[#allocation30_spill] sm:$0xff] }
 0x18f   :  { %781 = vmatpush.msra.mxu2 %v1761_v22  ;;  %801 = vmatpush.msra.mxu3 %v1811_v39  ;;  %v2682_v22 = vld [vmem:[#allocation38_spill] sm:$0xff]  ;;  %v425_v39 = vld [vmem:[#allocation4 + $0x50] sm:$0xff] }
 0x190   :  { %742 = vmatpush.msra.mxu0 %v1766_v24  ;;  %762 = vmatpush.msra.mxu1 %v1768_v25  ;;  %v2684_v24 = vld [vmem:[#allocation33_spill] sm:$0xff]  ;;  %v2685_v25 = vld [vmem:[#allocation34_spill] sm:$0xff] }
 0x191   :  { %782 = vmatpush.msra.mxu2 %v1773_v26  ;;  %802 = vmatpush.msra.mxu3 %v1823_v43  ;;  %v2686_v26 = vld [vmem:[#allocation39_spill] sm:$0xff] }
 0x192   :  { %743 = vmatpush.msra.mxu0 %v1778_v28  ;;  %763 = vmatpush.msra.mxu1 %v1780_v29  ;;  %v424_v28 = vld [vmem:[#allocation4 + $0x48] sm:$0xff] }
 0x193   :  { %783 = vmatpush.msra.mxu2 %v1785_v30  ;;  %803 = vmatpush.msra.mxu3 %v1835_v47 }
 0x194   :  { %744 = vmatpush.msra.mxu0 %v1790_v32  ;;  %764 = vmatpush.msra.mxu1 %v1792_v33 }
 0x195   :  { %784 = vmatpush.msra.mxu2 %v2661_v1  ;;  %804 = vmatpush.msra.mxu3 %v2662_v2 }
 0x196   :  { %745 = vmatpush.msra.mxu0 %v2663_v3  ;;  %765 = vmatpush.msra.mxu1 %v2664_v4 }
 0x197   :  { %785 = vmatpush.msra.mxu2 %v2665_v5  ;;  %805 = vmatpush.msra.mxu3 %v2666_v6 }
 0x198   :  { %746 = vmatpush.msra.mxu0 %v2667_v7  ;;  %766 = vmatpush.msra.mxu1 %v2668_v8 }
 0x199   :  { %786 = vmatpush.msra.mxu2 %v2669_v9  ;;  %806 = vmatpush.msra.mxu3 %v2670_v10 }
 0x19a   :  { %747 = vmatpush.msra.mxu0 %v2671_v11  ;;  %767 = vmatpush.msra.mxu1 %v2672_v12 }
 0x19b   :  { %787 = vmatpush.msra.mxu2 %v2673_v13  ;;  %807 = vmatpush.msra.mxu3 %v2674_v14 }
 0x19c   :  { %748 = vmatpush.msra.mxu0 %v2675_v15  ;;  %768 = vmatpush.msra.mxu1 %v2676_v16 }
 0x19d   :  { %788 = vmatpush.msra.mxu2 %v2677_v17  ;;  %808 = vmatpush.msra.mxu3 %v2678_v18 }
 0x19e   :  { %749 = vmatpush.msra.mxu0 %v2679_v19  ;;  %769 = vmatpush.msra.mxu1 %v2680_v20 }
 0x19f   :  { %789 = vmatpush.msra.mxu2 %v2681_v21  ;;  %809 = vmatpush.msra.mxu3 %v2682_v22  ;;  %v2161_v21 = vld [vmem:[#allocation7 + $0x1e8] sm:$0xff]  ;;  %v2164_v22 = vld [vmem:[#allocation7 + $0x1f0] sm:$0xff] }
 0x1a0   :  { %750 = vmatpush.msra.mxu0 %v2683_v23  ;;  %770 = vmatpush.msra.mxu1 %v2684_v24  ;;  %v2167_v23 = vld [vmem:[#allocation7 + $0x1f8] sm:$0xff]  ;;  %v2170_v24 = vld [vmem:[#allocation7 + $0x1c0] sm:$0xff] }
 0x1a1   :  { %790 = vmatpush.msra.mxu2 %v2685_v25  ;;  %810 = vmatpush.msra.mxu3 %v2686_v26  ;;  %v2173_v25 = vld [vmem:[#allocation7 + $0x1c8] sm:$0xff]  ;;  %v2176_v26 = vld [vmem:[#allocation7 + $0x1d0] sm:$0xff] }
 0x1fd   :  { %v444_v29 = vpop.f32.mrf.mxu0  ;;  %v464_v30 = vpop.f32.mrf.mxu1 }
 0x1fe   :  { %v507_v31 = vadd.f32 %v444_v29, %v423_v27  ;;  %v508_v32 = vadd.f32 %v464_v30, %v424_v28  ;;  %v2179_v27 = vld [vmem:[#allocation7 + $0x1d8] sm:$0xff]  ;;  %v2182_v28 = vld [vmem:[#allocation7 + $0x1a0] sm:$0xff]  ;;  %v2185_v29 = vld [vmem:[#allocation7 + $0x1a8] sm:$0xff] }
 0x1ff   :  { %v2188_v30 = vld [vmem:[#allocation7 + $0x1b0] sm:$0xff] }
 0x200   :  { %v1374_v33 = vmul.f32 -1.442695, %v507_v31  ;;  %v1375_v35 = vmul.f32 -1.442695, %v508_v32  ;;  %v2191_v31 = vld [vmem:[#allocation7 + $0x1b8] sm:$0xff]  ;;  %v2194_v32 = vld [vmem:[#allocation7 + $0x180] sm:$0xff] }
 0x202   :  { %1432 = vpow2.f32 %v1374_v33  ;;  %v2197_v33 = vld [vmem:[#allocation7 + $0x188] sm:$0xff] }
 0x203   :  { %1434 = vpow2.f32 %v1375_v35  ;;  %v2200_v35 = vld [vmem:[#allocation7 + $0x190] sm:$0xff] }
 0x204   :  { %v484_v43 = vpop.f32.mrf.mxu2  ;;  %v504_v46 = vpop.f32.mrf.mxu3 }
 0x205   :  { %v509_v47 = vadd.f32 %v484_v43, %v425_v39  ;;  %v510_v61 = vadd.f32 %v504_v46, %v426_v49  ;;  %v2203_v39 = vld [vmem:[#allocation7 + $0x198] sm:$0xff]  ;;  %v2206_v43 = vld [vmem:[#allocation7 + $0x160] sm:$0xff] }
 0x206   :  { %v2227_v49 = vld [vmem:[#allocation7 + $0x158] sm:$0xff]  ;;  %v2230_v46 = vld [vmem:[#allocation7 + $0x120] sm:$0xff] }
 0x207   :  { %v1376_v60 = vmul.f32 -1.442695, %v509_v47  ;;  %v2209_v47 = vld [vmem:[#allocation7 + $0x168] sm:$0xff] }
 0x208   :  { %v1433_v44 = vpop.eup %1432 }
 0x209   :  { %v1435_v34 = vpop.eup %1434  ;;  %v520_v36 = vadd.f32 1.0, %v1433_v44  ;;  %1436 = vpow2.f32 %v1376_v60  ;;  %v2212_v60 = vld [vmem:[#allocation7 + $0x170] sm:$0xff]  ;;  %v2215_v44 = vld [vmem:[#allocation7 + $0x178] sm:$0xff] }
 0x20a   :  { %v521_v40 = vadd.f32 1.0, %v1435_v34  ;;  %v2218_v34 = vld [vmem:[#allocation7 + $0x140] sm:$0xff] }
 0x20b   :  { %1438 = vrcp.f32 %v520_v36  ;;  %v534_v57 = vand.u32 2147483648, %v520_v36  ;;  %v532_v42 = vand.u32 2147483647, %v520_v36  ;;  %vm528_vm10 = vweird.f32 %v520_v36 }
 0x20c   :  { %1440 = vrcp.f32 %v521_v40  ;;  %v549_v0 = vand.u32 2147483648, %v521_v40  ;;  %v547_v56 = vand.u32 2147483647, %v521_v40  ;;  %vm543_vm11 = vweird.f32 %v521_v40 }
 0x20d   :  { %v535_v37 = vor.u32 1.1754944e-38, %v534_v57  ;;  %vm533_vm14 = vcmp.eq.f32.partialorder %v532_v42, 8.507059e+37  ;;  %v2260_v57 = vld [vmem:[#allocation7 + $0xf0] sm:$0xff]  ;;  %v2269_v42 = vld [vmem:[#allocation7 + $0xc8] sm:$0xff] }
 0x20e   :  { %v550_v2 = vor.u32 1.1754944e-38, %v549_v0  ;;  %vm548_vm15 = vcmp.eq.f32.partialorder %v547_v56, 8.507059e+37  ;;  %v2263_v0 = vld [vmem:[#allocation7 + $0xf8] sm:$0xff] }
 0x20f   :  { %v1437_v58 = vpop.eup %1436  ;;  %v2275_v56 = vld [vmem:[#allocation7 + $0xd8] sm:$0xff] }
 0x210   :  { %v522_v38 = vadd.f32 1.0, %v1437_v58  ;;  %v2233_v58 = vld [vmem:[#allocation7 + $0x128] sm:$0xff]  ;;  %2688 = vst [vmem:[#allocation14_spill] sm:$0xff] %v2275_v56 }
 0x211   :  { %v1439_v48 = vpop.eup %1438 }
 0x212   :  { %v1441_v54 = vpop.eup %1440  ;;  %v524_v50 = vmul.f32 %v1439_v48, %v520_v36  ;;  %1442 = vrcp.f32 %v522_v38  ;;  %vm529_vm8 = vweird.f32 %v1439_v48  ;;  %v564_v14 = vand.u32 2147483648, %v522_v38  ;;  %v2221_v36 = vld [vmem:[#allocation7 + $0x148] sm:$0xff] }
 0x213   :  { %v539_v59 = vmul.f32 %v1441_v54, %v521_v40  ;;  %1444 = vtanh.f32 %v510_v61  ;;  %vm544_vm9 = vweird.f32 %v1441_v54  ;;  %vm530_vm12 = vmor %vm528_vm10, %vm529_vm8  ;;  %vm558_vm1 = vweird.f32 %v522_v38  ;;  %v2224_v40 = vld [vmem:[#allocation7 + $0x150] sm:$0xff]  ;;  %v2242_v61 = vld [vmem:[#allocation7 + $0x100] sm:$0xff] }
 0x214   :  { %v525_v52 = vsub.f32 1.0, %v524_v50  ;;  %vm545_vm13 = vmor %vm543_vm11, %vm544_vm9  ;;  %v562_v15 = vand.u32 2147483647, %v522_v38  ;;  %v565_v17 = vor.u32 1.1754944e-38, %v564_v14  ;;  %v2248_v50 = vld [vmem:[#allocation7 + $0x110] sm:$0xff]  ;;  %v2326_v14 = vld [vmem:[#allocation7 + $0x20] sm:$0xff] }
 0x215   :  { %v540_v63 = vsub.f32 1.0, %v539_v59  ;;  %v2251_v59 = vld [vmem:[#allocation7 + $0x118] sm:$0xff]  ;;  %2705 = vst [vmem:[#allocation37_spill] sm:$0xff] %v2326_v14 }
 0x216   :  { %v526_v41 = vmul.f32 %v1439_v48, %v525_v52  ;;  %vm563_vm3 = vcmp.eq.f32.partialorder %v562_v15, 8.507059e+37  ;;  %v2254_v52 = vld [vmem:[#allocation7 + $0xe0] sm:$0xff]  ;;  %v2329_v15 = vld [vmem:[#allocation7 + $0x28] sm:$0xff] }
 0x217   :  { %v541_v51 = vmul.f32 %v1441_v54, %v540_v63  ;;  %v2257_v63 = vld [vmem:[#allocation7 + $0xe8] sm:$0xff]  ;;  %2706 = vst [vmem:[#allocation28_spill] sm:$0xff] %v2329_v15 }
 0x218   :  { %v1443_v55 = vpop.eup %1442  ;;  %v527_v45 = vadd.f32 %v1439_v48, %v526_v41  ;;  %v2266_v41 = vld [vmem:[#allocation7 + $0xc0] sm:$0xff] }
 0x219   :  { %v554_v53 = vmul.f32 %v1443_v55, %v522_v38  ;;  %v542_v1 = vadd.f32 %v1441_v54, %v541_v51  ;;  %v1445_v4 = vpop.eup %1444  ;;  %vm559_vm0 = vweird.f32 %v1443_v55  ;;  %v2236_v38 = vld [vmem:[#allocation7 + $0x130] sm:$0xff] }
 0x21a   :  { %v531_v3 = vsel %vm530_vm12, %v1439_v48, %v527_v45  ;;  %vm560_vm2 = vmor %vm558_vm1, %vm559_vm0  ;;  %v2239_v48 = vld [vmem:[#allocation7 + $0x138] sm:$0xff]  ;;  %v2272_v51 = vld [vmem:[#allocation7 + $0xd0] sm:$0xff] }
 0x21b   :  { %v555_v5 = vsub.f32 1.0, %v554_v53  ;;  %v536_v6 = vsel %vm533_vm14, %v535_v37, %v531_v3  ;;  %v546_v7 = vsel %vm545_vm13, %v1441_v54, %v542_v1  ;;  %v2245_v54 = vld [vmem:[#allocation7 + $0x108] sm:$0xff]  ;;  %2687 = vst [vmem:[#allocation13_spill] sm:$0xff] %v2272_v51  ;;  %v2284_v53 = vld [vmem:[#allocation7 + $0xb0] sm:$0xff]  ;;  %v2287_v37 = vld [vmem:[#allocation7 + $0xb8] sm:$0xff] }
 0x21c   :  { %v551_v8 = vsel %vm548_vm15, %v550_v2, %v546_v7  ;;  %v570_v9 = vmul.f32 %v1445_v4, %v536_v6  ;;  %v2281_v45 = vld [vmem:[#allocation7 + $0xa8] sm:$0xff]  ;;  %2691 = vst [vmem:[#allocation16_spill] sm:$0xff] %v2284_v53  ;;  %v2290_v1 = vld [vmem:[#allocation7 + $0x80] sm:$0xff]  ;;  %v2296_v3 = vld [vmem:[#allocation7 + $0x90] sm:$0xff] }
 0x21d   :  { %v556_v10 = vmul.f32 %v1443_v55, %v555_v5  ;;  %v569_v11 = vmul.f32 %v551_v8, %v2087_v62  ;;  %v2158_v62 = vld [vmem:[#allocation7 + $0x1e0] sm:$0xff]  ;;  %2690 = vst [vmem:[#allocation15_spill] sm:$0xff] %v2281_v45  ;;  %v2293_v2 = vld [vmem:[#allocation7 + $0x88] sm:$0xff]  ;;  %v2299_v4 = vld [vmem:[#allocation7 + $0x98] sm:$0xff] }
 0x21e   :  { %2692 = vst [vmem:[#allocation17_spill] sm:$0xff] %v2287_v37  ;;  %v2302_v5 = vld [vmem:[#allocation7 + $0x60] sm:$0xff]  ;;  %v2305_v6 = vld [vmem:[#allocation7 + $0x68] sm:$0xff]  ;;  %v2308_v7 = vld [vmem:[#allocation7 + $0x70] sm:$0xff] }
 0x21f   :  { %v2155_v12 = vadd.f32 %v570_v9, %v569_v11  ;;  %v557_v13 = vadd.f32 %v1443_v55, %v556_v10  ;;  %2693 = vst [vmem:[#allocation31_spill] sm:$0xff] %v2290_v1  ;;  %v2311_v8 = vld [vmem:[#allocation7 + $0x78] sm:$0xff]  ;;  %v2314_v9 = vld [vmem:[#allocation7 + $0x40] sm:$0xff]  ;;  %v2317_v10 = vld [vmem:[#allocation7 + $0x48] sm:$0xff] }
 0x220   :  { %2694 = vst [vmem:[#allocation18_spill] sm:$0xff] %v2293_v2  ;;  %v2320_v11 = vld [vmem:[#allocation7 + $0x50] sm:$0xff] }
 0x221   :  { %1446 = vtanh.f32 %v2155_v12  ;;  %v561_v16 = vsel %vm560_vm2, %v1443_v55, %v557_v13  ;;  %v2278_v55 = vld [vmem:[#allocation7 + $0xa0] sm:$0xff]  ;;  %2695 = vst [vmem:[#allocation19_spill] sm:$0xff] %v2296_v3  ;;  %v2323_v13 = vld [vmem:[#allocation7 + $0x58] sm:$0xff] }
 0x222   :  { %v566_v19 = vsel %vm563_vm3, %v565_v17, %v561_v16  ;;  %2689 = vst [vmem:[#allocation27_spill] sm:$0xff] %v2278_v55  ;;  %v2332_v16 = vld [vmem:[#allocation7 + $0x30] sm:$0xff]  ;;  %v2335_v17 = vld [vmem:[#allocation7 + $0x38] sm:$0xff] }
 0x223   :  { %2696 = vst [vmem:[#allocation20_spill] sm:$0xff] %v2299_v4 }
 0x224   :  { %2697 = vst [vmem:[#allocation35_spill] sm:$0xff] %v2302_v5 }
 0x225   :  { %2698 = vst [vmem:[#allocation21_spill] sm:$0xff] %v2305_v6 }
 0x226   :  { %2699 = vst [vmem:[#allocation22_spill] sm:$0xff] %v2308_v7 }
 0x227   :  { %v1447_v18 = vpop.eup %1446  ;;  %2700 = vst [vmem:[#allocation23_spill] sm:$0xff] %v2311_v8 }
 0x228   :  { %v573_v20 = vmul.f32 %v1447_v18, %v566_v19  ;;  %2701 = vst [vmem:[#allocation36_spill] sm:$0xff] %v2314_v9  ;;  %v2338_v18 = vld [vmem:[#allocation7] sm:$0xff]  ;;  %v2341_v19 = vld [vmem:[#allocation7 + $0x8] sm:$0xff] }
 0x229   :  { %2702 = vst [vmem:[#allocation24_spill] sm:$0xff] %v2317_v10 }
 0x22a   :  { %575 = vst [vmem:[#allocation9 + $0x10] sm:$0xff] %v573_v20  ;;  %597 = vmatmul.f32.vlgmr.msrb.gmra.mxu0 %v573_v20  ;;  %617 = vmatmul.f32.vlgmr.msrb.gmra.mxu1 %v573_v20 }
 0x22b   :  { %637 = vmatmul.f32.vlgmr.msrb.gmra.mxu2 %v573_v20  ;;  %657 = vmatmul.f32.vlgmr.msrb.gmra.mxu3 %v573_v20  ;;  %2703 = vst [vmem:[#allocation25_spill] sm:$0xff] %v2320_v11  ;;  %v2344_v20 = vld [vmem:[#allocation7 + $0x10] sm:$0xff] }
 0x22c   :  { %889 = vmatpush.msrb.mxu0 %v2158_v62  ;;  %909 = vmatpush.msrb.mxu1 %v2161_v21  ;;  %2704 = vst [vmem:[#allocation26_spill] sm:$0xff] %v2323_v13 }
 0x22d   :  { %929 = vmatpush.msrb.mxu2 %v2164_v22  ;;  %949 = vmatpush.msrb.mxu3 %v2167_v23  ;;  %2707 = vst [vmem:[#allocation29_spill] sm:$0xff] %v2332_v16 }
 0x22e   :  { %890 = vmatpush.msrb.mxu0 %v2170_v24  ;;  %910 = vmatpush.msrb.mxu1 %v2173_v25  ;;  %2708 = vst [vmem:[#allocation30_spill] sm:$0xff] %v2335_v17 }
 0x22f   :  { %930 = vmatpush.msrb.mxu2 %v2176_v26  ;;  %950 = vmatpush.msrb.mxu3 %v2179_v27  ;;  %2709 = vst [vmem:[#allocation38_spill] sm:$0xff] %v2338_v18 }
 0x230   :  { %891 = vmatpush.msrb.mxu0 %v2182_v28  ;;  %911 = vmatpush.msrb.mxu1 %v2185_v29  ;;  %2710 = vst [vmem:[#allocation32_spill] sm:$0xff] %v2341_v19 }
 0x231   :  { %931 = vmatpush.msrb.mxu2 %v2188_v30  ;;  %951 = vmatpush.msrb.mxu3 %v2191_v31  ;;  %2711 = vst [vmem:[#allocation33_spill] sm:$0xff] %v2344_v20 }
 0x232   :  { %892 = vmatpush.msrb.mxu0 %v2194_v32  ;;  %912 = vmatpush.msrb.mxu1 %v2197_v33 }
 0x233   :  { %932 = vmatpush.msrb.mxu2 %v2200_v35  ;;  %952 = vmatpush.msrb.mxu3 %v2203_v39 }
 0x234   :  { %893 = vmatpush.msrb.mxu0 %v2206_v43  ;;  %913 = vmatpush.msrb.mxu1 %v2209_v47 }
 0x235   :  { %933 = vmatpush.msrb.mxu2 %v2212_v60  ;;  %953 = vmatpush.msrb.mxu3 %v2215_v44 }
 0x236   :  { %894 = vmatpush.msrb.mxu0 %v2218_v34  ;;  %914 = vmatpush.msrb.mxu1 %v2221_v36 }
 0x237   :  { %934 = vmatpush.msrb.mxu2 %v2224_v40  ;;  %954 = vmatpush.msrb.mxu3 %v2227_v49 }
 0x238   :  { %895 = vmatpush.msrb.mxu0 %v2230_v46  ;;  %915 = vmatpush.msrb.mxu1 %v2233_v58 }
 0x239   :  { %935 = vmatpush.msrb.mxu2 %v2236_v38  ;;  %955 = vmatpush.msrb.mxu3 %v2239_v48 }
 0x23a   :  { %896 = vmatpush.msrb.mxu0 %v2242_v61  ;;  %916 = vmatpush.msrb.mxu1 %v2245_v54 }
 0x23b   :  { %936 = vmatpush.msrb.mxu2 %v2248_v50  ;;  %956 = vmatpush.msrb.mxu3 %v2251_v59 }
 0x23c   :  { %897 = vmatpush.msrb.mxu0 %v2254_v52  ;;  %917 = vmatpush.msrb.mxu1 %v2257_v63 }
 0x23d   :  { %937 = vmatpush.msrb.mxu2 %v2260_v57  ;;  %957 = vmatpush.msrb.mxu3 %v2263_v0 }
 0x23e   :  { %898 = vmatpush.msrb.mxu0 %v2266_v41  ;;  %918 = vmatpush.msrb.mxu1 %v2269_v42 }
 0x23f   :  { %938 = vmatpush.msrb.mxu2 %v2272_v51  ;;  %958 = vmatpush.msrb.mxu3 %v2275_v56 }
 0x240   :  { %899 = vmatpush.msrb.mxu0 %v2278_v55  ;;  %919 = vmatpush.msrb.mxu1 %v2281_v45 }
 0x241   :  { %939 = vmatpush.msrb.mxu2 %v2284_v53  ;;  %959 = vmatpush.msrb.mxu3 %v2287_v37 }
 0x242   :  { %900 = vmatpush.msrb.mxu0 %v2290_v1  ;;  %920 = vmatpush.msrb.mxu1 %v2293_v2 }
 0x243   :  { %940 = vmatpush.msrb.mxu2 %v2296_v3  ;;  %960 = vmatpush.msrb.mxu3 %v2299_v4 }
 0x244   :  { %901 = vmatpush.msrb.mxu0 %v2302_v5  ;;  %921 = vmatpush.msrb.mxu1 %v2305_v6 }
 0x245   :  { %941 = vmatpush.msrb.mxu2 %v2308_v7  ;;  %961 = vmatpush.msrb.mxu3 %v2311_v8  ;;  %v579_v8 = vld [vmem:[#allocation4 + $0x70] sm:$0xff] }
 0x246   :  { %902 = vmatpush.msrb.mxu0 %v2314_v9  ;;  %922 = vmatpush.msrb.mxu1 %v2317_v10 }
 0x247   :  { %942 = vmatpush.msrb.mxu2 %v2320_v11  ;;  %962 = vmatpush.msrb.mxu3 %v2323_v13 }
 0x248   :  { %903 = vmatpush.msrb.mxu0 %v2326_v14  ;;  %923 = vmatpush.msrb.mxu1 %v2329_v15  ;;  %v2347_v15 = vld [vmem:[#allocation7 + $0x18] sm:$0xff]  ;;  %v578_v14 = vld [vmem:[#allocation4 + $0x68] sm:$0xff] }
 0x249   :  { %943 = vmatpush.msrb.mxu2 %v2332_v16  ;;  %963 = vmatpush.msrb.mxu3 %v2335_v17  ;;  %2712 = vst [vmem:[#allocation34_spill] sm:$0xff] %v2347_v15  ;;  %v577_v16 = vld [vmem:[#allocation4 + $0x60] sm:$0xff] }
 0x24a   :  { %904 = vmatpush.msrb.mxu0 %v2338_v18  ;;  %924 = vmatpush.msrb.mxu1 %v2341_v19 }
 0x24b   :  { %944 = vmatpush.msrb.mxu2 %v2344_v20  ;;  %964 = vmatpush.msrb.mxu3 %v2347_v15  ;;  %v580_v15 = vld [vmem:[#allocation4 + $0x78] sm:$0xff] }
 0x2a7   :  { %v598_v13 = vpop.f32.mrf.mxu0  ;;  %v618_v17 = vpop.f32.mrf.mxu1 }
 0x2a8   :  { %v661_v11 = vadd.f32 %v598_v13, %v577_v16  ;;  %v662_v10 = vadd.f32 %v618_v17, %v578_v14 }
 0x2aa   :  { %v1377_v9 = vmul.f32 -1.442695, %v661_v11  ;;  %v1378_v18 = vmul.f32 -1.442695, %v662_v10 }
 0x2ac   :  { %1448 = vpow2.f32 %v1377_v9 }
 0x2ad   :  { %1450 = vpow2.f32 %v1378_v18 }
 0x2ae   :  { %v638_v19 = vpop.f32.mrf.mxu2  ;;  %v658_v2 = vpop.f32.mrf.mxu3 }
 0x2af   :  { %v663_v7 = vadd.f32 %v638_v19, %v579_v8  ;;  %v664_v11 = vadd.f32 %v658_v2, %v580_v15 }
 0x2b1   :  { %v1379_v6 = vmul.f32 -1.442695, %v663_v7 }
 0x2b2   :  { %v1449_v5 = vpop.eup %1448 }
 0x2b3   :  { %v1451_v20 = vpop.eup %1450  ;;  %v674_v4 = vadd.f32 1.0, %v1449_v5  ;;  %1452 = vpow2.f32 %v1379_v6 }
 0x2b4   :  { %v675_v3 = vadd.f32 1.0, %v1451_v20 }
 0x2b5   :  { %1454 = vrcp.f32 %v674_v4  ;;  %v688_v7 = vand.u32 2147483648, %v674_v4  ;;  %v686_v6 = vand.u32 2147483647, %v674_v4  ;;  %vm682_vm6 = vweird.f32 %v674_v4 }
 0x2b6   :  { %1456 = vrcp.f32 %v675_v3  ;;  %v703_v18 = vand.u32 2147483648, %v675_v3  ;;  %v701_v20 = vand.u32 2147483647, %v675_v3  ;;  %vm697_vm7 = vweird.f32 %v675_v3 }
 0x2b7   :  { %v689_v2 = vor.u32 1.1754944e-38, %v688_v7  ;;  %vm687_vm10 = vcmp.eq.f32.partialorder %v686_v6, 8.507059e+37 }
 0x2b8   :  { %vm702_vm11 = vcmp.eq.f32.partialorder %v701_v20, 8.507059e+37  ;;  %v2720_v20 = vld [vmem:[#allocation18_spill] sm:$0xff] }
 0x2b9   :  { %v1453_v1 = vpop.eup %1452 }
 0x2ba   :  { %v676_v13 = vadd.f32 1.0, %v1453_v1 }
 0x2bb   :  { %v1455_v14 = vpop.eup %1454 }
 0x2bc   :  { %v1457_v10 = vpop.eup %1456  ;;  %v678_v9 = vmul.f32 %v1455_v14, %v674_v4  ;;  %1458 = vrcp.f32 %v676_v13  ;;  %vm683_vm4 = vweird.f32 %v1455_v14  ;;  %v718_v7 = vand.u32 2147483648, %v676_v13 }
 0x2bd   :  { %v693_v16 = vmul.f32 %v1457_v10, %v675_v3  ;;  %1460 = vtanh.f32 %v664_v11  ;;  %vm698_vm5 = vweird.f32 %v1457_v10  ;;  %vm684_vm8 = vmor %vm682_vm6, %vm683_vm4  ;;  %vm712_vm13 = vweird.f32 %v676_v13 }
 0x2be   :  { %v679_v17 = vsub.f32 1.0, %v678_v9  ;;  %vm699_vm9 = vmor %vm697_vm7, %vm698_vm5  ;;  %v704_v9 = vor.u32 1.1754944e-38, %v703_v18  ;;  %v719_v18 = vor.u32 1.1754944e-38, %v718_v7  ;;  %v2731_v7 = vld [vmem:[#allocation37_spill] sm:$0xff] }
 0x2bf   :  { %v694_v8 = vsub.f32 1.0, %v693_v16 }
 0x2c0   :  { %v680_v5 = vmul.f32 %v1455_v14, %v679_v17 }
 0x2c1   :  { %v695_v19 = vmul.f32 %v1457_v10, %v694_v8 }
 0x2c2   :  { %v1459_v37 = vpop.eup %1458  ;;  %v681_v53 = vadd.f32 %v1455_v14, %v680_v5 }
 0x2c3   :  { %v708_v1 = vmul.f32 %v1459_v37, %v676_v13  ;;  %v696_v15 = vadd.f32 %v1457_v10, %v695_v19  ;;  %v1461_v11 = vpop.eup %1460  ;;  %vm713_vm12 = vweird.f32 %v1459_v37  ;;  %v2719_v19 = vld [vmem:[#allocation31_spill] sm:$0xff] }
 0x2c4   :  { %v685_v16 = vsel %vm684_vm8, %v1455_v14, %v681_v53  ;;  %v716_v53 = vand.u32 2147483647, %v676_v13  ;;  %vm714_vm14 = vmor %vm712_vm13, %vm713_vm12  ;;  %v2718_v13 = vld [vmem:[#allocation17_spill] sm:$0xff] }
 0x2c5   :  { %v709_v45 = vsub.f32 1.0, %v708_v1  ;;  %v690_v17 = vsel %vm687_vm10, %v689_v2, %v685_v16  ;;  %v700_v55 = vsel %vm699_vm9, %v1457_v10, %v696_v15  ;;  %v2721_v1 = vld [vmem:[#allocation19_spill] sm:$0xff]  ;;  %v2722_v2 = vld [vmem:[#allocation20_spill] sm:$0xff]  ;;  %v2725_v16 = vld [vmem:[#allocation22_spill] sm:$0xff] }
 0x2c6   :  { %v705_v8 = vsel %vm702_vm11, %v704_v9, %v700_v55  ;;  %v724_v56 = vmul.f32 %v1461_v11, %v690_v17  ;;  %vm717_vm15 = vcmp.eq.f32.partialorder %v716_v53, 8.507059e+37  ;;  %v2723_v15 = vld [vmem:[#allocation35_spill] sm:$0xff]  ;;  %v2724_v9 = vld [vmem:[#allocation21_spill] sm:$0xff]  ;;  %v2727_v17 = vld [vmem:[#allocation36_spill] sm:$0xff] }
 0x2c7   :  { %v710_v51 = vmul.f32 %v1459_v37, %v709_v45  ;;  %v723_v5 = vmul.f32 %v705_v8, %v2155_v12  ;;  %v2713_v12 = vld [vmem:[#allocation13_spill] sm:$0xff]  ;;  %v2716_v45 = vld [vmem:[#allocation15_spill] sm:$0xff]  ;;  %v2728_v8 = vld [vmem:[#allocation24_spill] sm:$0xff] }
 0x2c8   :  { %v2726_v11 = vld [vmem:[#allocation23_spill] sm:$0xff]  ;;  %v2732_v53 = vld [vmem:[#allocation28_spill] sm:$0xff] }
 0x2c9   :  { %v2351_v4 = vadd.f32 %v724_v56, %v723_v5  ;;  %v711_v3 = vadd.f32 %v1459_v37, %v710_v51  ;;  %v2714_v51 = vld [vmem:[#allocation14_spill] sm:$0xff]  ;;  %v2715_v56 = vld [vmem:[#allocation27_spill] sm:$0xff]  ;;  %v2729_v5 = vld [vmem:[#allocation25_spill] sm:$0xff] }
 0x2cb   :  { %1462 = vtanh.f32 %v2351_v4  ;;  %v715_v14 = vsel %vm714_vm14, %v1459_v37, %v711_v3  ;;  %v2717_v37 = vld [vmem:[#allocation16_spill] sm:$0xff]  ;;  %v2730_v3 = vld [vmem:[#allocation26_spill] sm:$0xff] }
 0x2cc   :  { %v720_v6 = vsel %vm717_vm15, %v719_v18, %v715_v14  ;;  %v2733_v14 = vld [vmem:[#allocation29_spill] sm:$0xff]  ;;  %v2734_v18 = vld [vmem:[#allocation30_spill] sm:$0xff] }
 0x2d1   :  { %v1463_v10 = vpop.eup %1462 }
 0x2d2   :  { %v727_v55 = vmul.f32 %v1463_v10, %v720_v6  ;;  %v2735_v10 = vld [vmem:[#allocation38_spill] sm:$0xff]  ;;  %v2736_v6 = vld [vmem:[#allocation32_spill] sm:$0xff] }
 0x2d4   :  { %729 = vst [vmem:[#allocation9 + $0x18] sm:$0xff] %v727_v55  ;;  %751 = vmatmul.f32.vlgmr.msra.gmra.mxu0 %v727_v55  ;;  %771 = vmatmul.f32.vlgmr.msra.gmra.mxu1 %v727_v55 }
 0x2d5   :  { %791 = vmatmul.f32.vlgmr.msra.gmra.mxu2 %v727_v55  ;;  %811 = vmatmul.f32.vlgmr.msra.gmra.mxu3 %v727_v55  ;;  %v2737_v55 = vld [vmem:[#allocation33_spill] sm:$0xff] }
 0x2d6   :  { %1043 = vmatpush.msra.mxu0 %v2158_v62  ;;  %1063 = vmatpush.msra.mxu1 %v2161_v21 }
 0x2d7   :  { %1083 = vmatpush.msra.mxu2 %v2164_v22  ;;  %1103 = vmatpush.msra.mxu3 %v2167_v23 }
 0x2d8   :  { %1044 = vmatpush.msra.mxu0 %v2170_v24  ;;  %1064 = vmatpush.msra.mxu1 %v2173_v25 }
 0x2d9   :  { %1084 = vmatpush.msra.mxu2 %v2176_v26  ;;  %1104 = vmatpush.msra.mxu3 %v2179_v27 }
 0x2da   :  { %1045 = vmatpush.msra.mxu0 %v2182_v28  ;;  %1065 = vmatpush.msra.mxu1 %v2185_v29 }
 0x2db   :  { %1085 = vmatpush.msra.mxu2 %v2188_v30  ;;  %1105 = vmatpush.msra.mxu3 %v2191_v31 }
 0x2dc   :  { %1046 = vmatpush.msra.mxu0 %v2194_v32  ;;  %1066 = vmatpush.msra.mxu1 %v2197_v33 }
 0x2dd   :  { %1086 = vmatpush.msra.mxu2 %v2200_v35  ;;  %1106 = vmatpush.msra.mxu3 %v2203_v39 }
 0x2de   :  { %1047 = vmatpush.msra.mxu0 %v2206_v43  ;;  %1067 = vmatpush.msra.mxu1 %v2209_v47 }
 0x2df   :  { %1087 = vmatpush.msra.mxu2 %v2212_v60  ;;  %1107 = vmatpush.msra.mxu3 %v2215_v44 }
 0x2e0   :  { %1048 = vmatpush.msra.mxu0 %v2218_v34  ;;  %1068 = vmatpush.msra.mxu1 %v2221_v36 }
 0x2e1   :  { %1088 = vmatpush.msra.mxu2 %v2224_v40  ;;  %1108 = vmatpush.msra.mxu3 %v2227_v49 }
 0x2e2   :  { %1049 = vmatpush.msra.mxu0 %v2230_v46  ;;  %1069 = vmatpush.msra.mxu1 %v2233_v58 }
 0x2e3   :  { %1089 = vmatpush.msra.mxu2 %v2236_v38  ;;  %1109 = vmatpush.msra.mxu3 %v2239_v48 }
 0x2e4   :  { %1050 = vmatpush.msra.mxu0 %v2242_v61  ;;  %1070 = vmatpush.msra.mxu1 %v2245_v54 }
 0x2e5   :  { %1090 = vmatpush.msra.mxu2 %v2248_v50  ;;  %1110 = vmatpush.msra.mxu3 %v2251_v59 }
 0x2e6   :  { %1051 = vmatpush.msra.mxu0 %v2254_v52  ;;  %1071 = vmatpush.msra.mxu1 %v2257_v63 }
 0x2e7   :  { %1091 = vmatpush.msra.mxu2 %v2260_v57  ;;  %1111 = vmatpush.msra.mxu3 %v2263_v0 }
 0x2e8   :  { %1052 = vmatpush.msra.mxu0 %v2266_v41  ;;  %1072 = vmatpush.msra.mxu1 %v2269_v42 }
 0x2e9   :  { %1092 = vmatpush.msra.mxu2 %v2713_v12  ;;  %1112 = vmatpush.msra.mxu3 %v2714_v51 }
 0x2ea   :  { %1053 = vmatpush.msra.mxu0 %v2715_v56  ;;  %1073 = vmatpush.msra.mxu1 %v2716_v45 }
 0x2eb   :  { %1093 = vmatpush.msra.mxu2 %v2717_v37  ;;  %1113 = vmatpush.msra.mxu3 %v2718_v13 }
 0x2ec   :  { %1054 = vmatpush.msra.mxu0 %v2719_v19  ;;  %1074 = vmatpush.msra.mxu1 %v2720_v20 }
 0x2ed   :  { %1094 = vmatpush.msra.mxu2 %v2721_v1  ;;  %1114 = vmatpush.msra.mxu3 %v2722_v2 }
 0x2ee   :  { %1055 = vmatpush.msra.mxu0 %v2723_v15  ;;  %1075 = vmatpush.msra.mxu1 %v2724_v9 }
 0x2ef   :  { %1095 = vmatpush.msra.mxu2 %v2725_v16  ;;  %1115 = vmatpush.msra.mxu3 %v2726_v11 }
 0x2f0   :  { %1056 = vmatpush.msra.mxu0 %v2727_v17  ;;  %1076 = vmatpush.msra.mxu1 %v2728_v8  ;;  %v2738_v17 = vld [vmem:[#allocation34_spill] sm:$0xff]  ;;  %v731_v8 = vld [vmem:[#allocation4 + $0x80] sm:$0xff] }
 0x2f1   :  { %1096 = vmatpush.msra.mxu2 %v2729_v5  ;;  %1116 = vmatpush.msra.mxu3 %v2730_v3  ;;  %v732_v5 = vld [vmem:[#allocation4 + $0x88] sm:$0xff] }
 0x2f2   :  { %1057 = vmatpush.msra.mxu0 %v2731_v7  ;;  %1077 = vmatpush.msra.mxu1 %v2732_v53 }
 0x2f3   :  { %1097 = vmatpush.msra.mxu2 %v2733_v14  ;;  %1117 = vmatpush.msra.mxu3 %v2734_v18  ;;  %v733_v14 = vld [vmem:[#allocation4 + $0x90] sm:$0xff] }
 0x2f4   :  { %1058 = vmatpush.msra.mxu0 %v2735_v10  ;;  %1078 = vmatpush.msra.mxu1 %v2736_v6 }
 0x2f5   :  { %1098 = vmatpush.msra.mxu2 %v2737_v55  ;;  %1118 = vmatpush.msra.mxu3 %v2738_v17  ;;  %v734_v17 = vld [vmem:[#allocation4 + $0x98] sm:$0xff] }
 0x351   :  { %v752_v11 = vpop.f32.mrf.mxu0  ;;  %v772_v3 = vpop.f32.mrf.mxu1 }
 0x352   :  { %v815_v16 = vadd.f32 %v752_v11, %v731_v8  ;;  %v816_v7 = vadd.f32 %v772_v3, %v732_v5 }
 0x354   :  { %v1380_v9 = vmul.f32 -1.442695, %v815_v16  ;;  %v1381_v53 = vmul.f32 -1.442695, %v816_v7 }
 0x356   :  { %1464 = vpow2.f32 %v1380_v9 }
 0x357   :  { %1466 = vpow2.f32 %v1381_v53 }
 0x358   :  { %v792_v18 = vpop.f32.mrf.mxu2  ;;  %v812_v20 = vpop.f32.mrf.mxu3 }
 0x359   :  { %v817_v15 = vadd.f32 %v792_v18, %v733_v14  ;;  %v818_v16 = vadd.f32 %v812_v20, %v734_v17 }
 0x35b   :  { %v1382_v10 = vmul.f32 -1.442695, %v817_v15 }
 0x35c   :  { %v1465_v2 = vpop.eup %1464 }
 0x35d   :  { %v1467_v6 = vpop.eup %1466  ;;  %v828_v1 = vadd.f32 1.0, %v1465_v2  ;;  %1468 = vpow2.f32 %v1382_v10 }
 0x35e   :  { %v829_v55 = vadd.f32 1.0, %v1467_v6 }
 0x35f   :  { %1470 = vrcp.f32 %v828_v1  ;;  %v842_v15 = vand.u32 2147483648, %v828_v1  ;;  %v840_v18 = vand.u32 2147483647, %v828_v1  ;;  %vm836_vm2 = vweird.f32 %v828_v1 }
 0x360   :  { %1472 = vrcp.f32 %v829_v55  ;;  %v857_v14 = vand.u32 2147483648, %v829_v55  ;;  %v855_v6 = vand.u32 2147483647, %v829_v55  ;;  %vm851_vm3 = vweird.f32 %v829_v55 }
 0x361   :  { %v843_v20 = vor.u32 1.1754944e-38, %v842_v15  ;;  %vm841_vm6 = vcmp.eq.f32.partialorder %v840_v18, 8.507059e+37 }
 0x362   :  { %vm856_vm7 = vcmp.eq.f32.partialorder %v855_v6, 8.507059e+37 }
 0x363   :  { %v1469_v19 = vpop.eup %1468 }
 0x364   :  { %v830_v11 = vadd.f32 1.0, %v1469_v19 }
 0x365   :  { %v1471_v8 = vpop.eup %1470 }
 0x366   :  { %v1473_v5 = vpop.eup %1472  ;;  %v832_v9 = vmul.f32 %v1471_v8, %v828_v1  ;;  %1474 = vrcp.f32 %v830_v11  ;;  %vm837_vm0 = vweird.f32 %v1471_v8  ;;  %v872_v15 = vand.u32 2147483648, %v830_v11 }
 0x367   :  { %v847_v3 = vmul.f32 %v1473_v5, %v829_v55  ;;  %1476 = vtanh.f32 %v818_v16  ;;  %vm852_vm1 = vweird.f32 %v1473_v5  ;;  %vm838_vm4 = vmor %vm836_vm2, %vm837_vm0  ;;  %vm866_vm9 = vweird.f32 %v830_v11 }
 0x368   :  { %v833_v7 = vsub.f32 1.0, %v832_v9  ;;  %vm853_vm5 = vmor %vm851_vm3, %vm852_vm1  ;;  %v858_v9 = vor.u32 1.1754944e-38, %v857_v14  ;;  %v873_v14 = vor.u32 1.1754944e-38, %v872_v15 }
 0x369   :  { %v848_v53 = vsub.f32 1.0, %v847_v3 }
 0x36a   :  { %v834_v2 = vmul.f32 %v1471_v8, %v833_v7 }
 0x36b   :  { %v849_v10 = vmul.f32 %v1473_v5, %v848_v53 }
 0x36c   :  { %v1475_v13 = vpop.eup %1474  ;;  %v835_v37 = vadd.f32 %v1471_v8, %v834_v2 }
 0x36d   :  { %v862_v19 = vmul.f32 %v1475_v13, %v830_v11  ;;  %v850_v17 = vadd.f32 %v1473_v5, %v849_v10  ;;  %v1477_v16 = vpop.eup %1476  ;;  %vm867_vm8 = vweird.f32 %v1475_v13 }
 0x36e   :  { %v839_v3 = vsel %vm838_vm4, %v1471_v8, %v835_v37  ;;  %v870_v37 = vand.u32 2147483647, %v830_v11  ;;  %vm868_vm10 = vmor %vm866_vm9, %vm867_vm8 }
 0x36f   :  { %v863_v45 = vsub.f32 1.0, %v862_v19  ;;  %v844_v7 = vsel %vm841_vm6, %v843_v20, %v839_v3  ;;  %v854_v56 = vsel %vm853_vm5, %v1473_v5, %v850_v17 }
 0x370   :  { %v859_v53 = vsel %vm856_vm7, %v858_v9, %v854_v56  ;;  %v878_v51 = vmul.f32 %v1477_v16, %v844_v7  ;;  %vm871_vm11 = vcmp.eq.f32.partialorder %v870_v37, 8.507059e+37 }
 0x371   :  { %v864_v12 = vmul.f32 %v1475_v13, %v863_v45  ;;  %v877_v2 = vmul.f32 %v859_v53, %v2351_v4 }
 0x373   :  { %v2419_v1 = vadd.f32 %v878_v51, %v877_v2  ;;  %v865_v55 = vadd.f32 %v1475_v13, %v864_v12 }
 0x375   :  { %1478 = vtanh.f32 %v2419_v1  ;;  %v869_v8 = vsel %vm868_vm10, %v1475_v13, %v865_v55  ;;  %v888_v13 = vld [vmem:[#allocation4 + $0xb8] sm:$0xff] }
 0x376   :  { %v874_v18 = vsel %vm871_vm11, %v873_v14, %v869_v8 }
 0x37b   :  { %v1479_v5 = vpop.eup %1478 }
 0x37c   :  { %v881_v56 = vmul.f32 %v1479_v5, %v874_v18 }
 0x37e   :  { %883 = vst [vmem:[#allocation9 + $0x20] sm:$0xff] %v881_v56  ;;  %905 = vmatmul.f32.vlgmr.msrb.gmra.mxu0 %v881_v56  ;;  %925 = vmatmul.f32.vlgmr.msrb.gmra.mxu1 %v881_v56 }
 0x37f   :  { %945 = vmatmul.f32.vlgmr.msrb.gmra.mxu2 %v881_v56  ;;  %965 = vmatmul.f32.vlgmr.msrb.gmra.mxu3 %v881_v56 }
 0x380   :  { %1197 = vmatpush.msrb.mxu0 %v2158_v62  ;;  %1217 = vmatpush.msrb.mxu1 %v2161_v21  ;;  %v2739_v62 = vld [vmem:[#allocation13_spill] sm:$0xff]  ;;  %v2740_v21 = vld [vmem:[#allocation14_spill] sm:$0xff] }
 0x381   :  { %1237 = vmatpush.msrb.mxu2 %v2164_v22  ;;  %1257 = vmatpush.msrb.mxu3 %v2167_v23  ;;  %v2741_v22 = vld [vmem:[#allocation27_spill] sm:$0xff] }
 0x382   :  { %1198 = vmatpush.msrb.mxu0 %v2170_v24  ;;  %1218 = vmatpush.msrb.mxu1 %v2173_v25  ;;  %v2742_v23 = vld [vmem:[#allocation15_spill] sm:$0xff]  ;;  %v2743_v24 = vld [vmem:[#allocation16_spill] sm:$0xff]  ;;  %v2744_v25 = vld [vmem:[#allocation17_spill] sm:$0xff] }
 0x383   :  { %1238 = vmatpush.msrb.mxu2 %v2176_v26  ;;  %1258 = vmatpush.msrb.mxu3 %v2179_v27  ;;  %v2745_v26 = vld [vmem:[#allocation31_spill] sm:$0xff]  ;;  %v2746_v27 = vld [vmem:[#allocation18_spill] sm:$0xff] }
 0x384   :  { %1199 = vmatpush.msrb.mxu0 %v2182_v28  ;;  %1219 = vmatpush.msrb.mxu1 %v2185_v29  ;;  %v2747_v28 = vld [vmem:[#allocation19_spill] sm:$0xff]  ;;  %v2748_v29 = vld [vmem:[#allocation20_spill] sm:$0xff] }
 0x385   :  { %1239 = vmatpush.msrb.mxu2 %v2188_v30  ;;  %1259 = vmatpush.msrb.mxu3 %v2191_v31  ;;  %v2749_v30 = vld [vmem:[#allocation35_spill] sm:$0xff]  ;;  %v2750_v31 = vld [vmem:[#allocation21_spill] sm:$0xff] }
 0x386   :  { %1200 = vmatpush.msrb.mxu0 %v2194_v32  ;;  %1220 = vmatpush.msrb.mxu1 %v2197_v33  ;;  %v2751_v32 = vld [vmem:[#allocation22_spill] sm:$0xff]  ;;  %v2752_v33 = vld [vmem:[#allocation23_spill] sm:$0xff] }
 0x387   :  { %1240 = vmatpush.msrb.mxu2 %v2200_v35  ;;  %1260 = vmatpush.msrb.mxu3 %v2203_v39  ;;  %v2753_v35 = vld [vmem:[#allocation36_spill] sm:$0xff] }
 0x388   :  { %1201 = vmatpush.msrb.mxu0 %v2206_v43  ;;  %1221 = vmatpush.msrb.mxu1 %v2209_v47  ;;  %v2754_v39 = vld [vmem:[#allocation24_spill] sm:$0xff]  ;;  %v2755_v43 = vld [vmem:[#allocation25_spill] sm:$0xff]  ;;  %v2756_v47 = vld [vmem:[#allocation26_spill] sm:$0xff] }
 0x389   :  { %1241 = vmatpush.msrb.mxu2 %v2212_v60  ;;  %1261 = vmatpush.msrb.mxu3 %v2215_v44  ;;  %v2757_v60 = vld [vmem:[#allocation37_spill] sm:$0xff]  ;;  %v2758_v44 = vld [vmem:[#allocation28_spill] sm:$0xff] }
 0x38a   :  { %1202 = vmatpush.msrb.mxu0 %v2218_v34  ;;  %1222 = vmatpush.msrb.mxu1 %v2221_v36  ;;  %v2759_v34 = vld [vmem:[#allocation29_spill] sm:$0xff]  ;;  %v2760_v36 = vld [vmem:[#allocation30_spill] sm:$0xff] }
 0x38b   :  { %1242 = vmatpush.msrb.mxu2 %v2224_v40  ;;  %1262 = vmatpush.msrb.mxu3 %v2227_v49  ;;  %v2761_v40 = vld [vmem:[#allocation38_spill] sm:$0xff]  ;;  %v2762_v49 = vld [vmem:[#allocation32_spill] sm:$0xff] }
 0x38c   :  { %1203 = vmatpush.msrb.mxu0 %v2230_v46  ;;  %1223 = vmatpush.msrb.mxu1 %v2233_v58  ;;  %v2763_v46 = vld [vmem:[#allocation33_spill] sm:$0xff]  ;;  %v2764_v58 = vld [vmem:[#allocation34_spill] sm:$0xff] }
 0x38d   :  { %1243 = vmatpush.msrb.mxu2 %v2236_v38  ;;  %1263 = vmatpush.msrb.mxu3 %v2239_v48  ;;  %v885_v38 = vld [vmem:[#allocation4 + $0xa0] sm:$0xff]  ;;  %v886_v48 = vld [vmem:[#allocation4 + $0xa8] sm:$0xff] }
 0x38e   :  { %1204 = vmatpush.msrb.mxu0 %v2242_v61  ;;  %1224 = vmatpush.msrb.mxu1 %v2245_v54 }
 0x38f   :  { %1244 = vmatpush.msrb.mxu2 %v2248_v50  ;;  %1264 = vmatpush.msrb.mxu3 %v2251_v59 }
 0x390   :  { %1205 = vmatpush.msrb.mxu0 %v2254_v52  ;;  %1225 = vmatpush.msrb.mxu1 %v2257_v63 }
 0x391   :  { %1245 = vmatpush.msrb.mxu2 %v2260_v57  ;;  %1265 = vmatpush.msrb.mxu3 %v2263_v0  ;;  %v887_v57 = vld [vmem:[#allocation4 + $0xb0] sm:$0xff] }
 0x392   :  { %1206 = vmatpush.msrb.mxu0 %v2266_v41  ;;  %1226 = vmatpush.msrb.mxu1 %v2269_v42 }
 0x393   :  { %1246 = vmatpush.msrb.mxu2 %v2739_v62  ;;  %1266 = vmatpush.msrb.mxu3 %v2740_v21 }
 0x394   :  { %1207 = vmatpush.msrb.mxu0 %v2741_v22  ;;  %1227 = vmatpush.msrb.mxu1 %v2742_v23 }
 0x395   :  { %1247 = vmatpush.msrb.mxu2 %v2743_v24  ;;  %1267 = vmatpush.msrb.mxu3 %v2744_v25 }
 0x396   :  { %1208 = vmatpush.msrb.mxu0 %v2745_v26  ;;  %1228 = vmatpush.msrb.mxu1 %v2746_v27 }
 0x397   :  { %1248 = vmatpush.msrb.mxu2 %v2747_v28  ;;  %1268 = vmatpush.msrb.mxu3 %v2748_v29 }
 0x398   :  { %1209 = vmatpush.msrb.mxu0 %v2749_v30  ;;  %1229 = vmatpush.msrb.mxu1 %v2750_v31 }
 0x399   :  { %1249 = vmatpush.msrb.mxu2 %v2751_v32  ;;  %1269 = vmatpush.msrb.mxu3 %v2752_v33 }
 0x39a   :  { %1210 = vmatpush.msrb.mxu0 %v2753_v35  ;;  %1230 = vmatpush.msrb.mxu1 %v2754_v39 }
 0x39b   :  { %1250 = vmatpush.msrb.mxu2 %v2755_v43  ;;  %1270 = vmatpush.msrb.mxu3 %v2756_v47 }
 0x39c   :  { %1211 = vmatpush.msrb.mxu0 %v2757_v60  ;;  %1231 = vmatpush.msrb.mxu1 %v2758_v44 }
 0x39d   :  { %1251 = vmatpush.msrb.mxu2 %v2759_v34  ;;  %1271 = vmatpush.msrb.mxu3 %v2760_v36  ;;  %v1040_v34 = vld [vmem:[#allocation4 + $0xc8] sm:$0xff] }
 0x39e   :  { %1212 = vmatpush.msrb.mxu0 %v2761_v40  ;;  %1232 = vmatpush.msrb.mxu1 %v2762_v49 }
 0x39f   :  { %1252 = vmatpush.msrb.mxu2 %v2763_v46  ;;  %1272 = vmatpush.msrb.mxu3 %v2764_v58 }
 0x3fb   :  { %v906_v61 = vpop.f32.mrf.mxu0  ;;  %v926_v54 = vpop.f32.mrf.mxu1 }
 0x3fc   :  { %v969_v50 = vadd.f32 %v906_v61, %v885_v38  ;;  %v970_v59 = vadd.f32 %v926_v54, %v886_v48  ;;  %v1041_v48 = vld [vmem:[#allocation4 + $0xd0] sm:$0xff] }
 0x3fe   :  { %v1383_v52 = vmul.f32 -1.442695, %v969_v50  ;;  %v1384_v63 = vmul.f32 -1.442695, %v970_v59 }
 0x400   :  { %1480 = vpow2.f32 %v1383_v52 }
 0x401   :  { %1482 = vpow2.f32 %v1384_v63 }
 0x402   :  { %v946_v0 = vpop.f32.mrf.mxu2  ;;  %v966_v11 = vpop.f32.mrf.mxu3 }
 0x403   :  { %v971_v41 = vadd.f32 %v946_v0, %v887_v57  ;;  %v972_v20 = vadd.f32 %v966_v11, %v888_v13  ;;  %v1042_v0 = vld [vmem:[#allocation4 + $0xd8] sm:$0xff] }
 0x405   :  { %v1385_v42 = vmul.f32 -1.442695, %v971_v41 }
 0x406   :  { %v1481_v4 = vpop.eup %1480 }
 0x407   :  { %v1483_v12 = vpop.eup %1482  ;;  %v982_v51 = vadd.f32 1.0, %v1481_v4  ;;  %1484 = vpow2.f32 %v1385_v42 }
 0x408   :  { %v983_v45 = vadd.f32 1.0, %v1483_v12 }
 0x409   :  { %1486 = vrcp.f32 %v982_v51  ;;  %v996_v53 = vand.u32 2147483648, %v982_v51  ;;  %v994_v15 = vand.u32 2147483647, %v982_v51  ;;  %vm990_vm14 = vweird.f32 %v982_v51 }
 0x40a   :  { %1488 = vrcp.f32 %v983_v45  ;;  %v1011_v2 = vand.u32 2147483648, %v983_v45  ;;  %v1009_v8 = vand.u32 2147483647, %v983_v45  ;;  %vm1005_vm15 = vweird.f32 %v983_v45 }
 0x40b   :  { %v997_v56 = vor.u32 1.1754944e-38, %v996_v53  ;;  %vm995_vm2 = vcmp.eq.f32.partialorder %v994_v15, 8.507059e+37 }
 0x40c   :  { %v1012_v21 = vor.u32 1.1754944e-38, %v1011_v2  ;;  %vm1010_vm3 = vcmp.eq.f32.partialorder %v1009_v8, 8.507059e+37 }
 0x40d   :  { %v1485_v10 = vpop.eup %1484 }
 0x40e   :  { %v984_v6 = vadd.f32 1.0, %v1485_v10 }
 0x40f   :  { %v1487_v19 = vpop.eup %1486 }
 0x410   :  { %v1489_v17 = vpop.eup %1488  ;;  %v986_v9 = vmul.f32 %v1487_v19, %v982_v51  ;;  %1490 = vrcp.f32 %v984_v6  ;;  %vm991_vm12 = vweird.f32 %v1487_v19  ;;  %v1026_v33 = vand.u32 2147483648, %v984_v6 }
 0x411   :  { %v1001_v3 = vmul.f32 %v1489_v17, %v983_v45  ;;  %1492 = vtanh.f32 %v972_v20  ;;  %vm1006_vm13 = vweird.f32 %v1489_v17  ;;  %vm992_vm0 = vmor %vm990_vm14, %vm991_vm12  ;;  %vm1020_vm5 = vweird.f32 %v984_v6 }
 0x412   :  { %v987_v16 = vsub.f32 1.0, %v986_v9  ;;  %vm1007_vm1 = vmor %vm1005_vm15, %vm1006_vm13  ;;  %v1024_v35 = vand.u32 2147483647, %v984_v6  ;;  %v1027_v43 = vor.u32 1.1754944e-38, %v1026_v33 }
 0x413   :  { %v1002_v7 = vsub.f32 1.0, %v1001_v3 }
 0x414   :  { %v988_v55 = vmul.f32 %v1487_v19, %v987_v16  ;;  %vm1025_vm7 = vcmp.eq.f32.partialorder %v1024_v35, 8.507059e+37  ;;  %v1194_v35 = vld [vmem:[#allocation4 + $0xe8] sm:$0xff] }
 0x415   :  { %v1003_v37 = vmul.f32 %v1489_v17, %v1002_v7 }
 0x416   :  { %v1491_v14 = vpop.eup %1490  ;;  %v989_v5 = vadd.f32 %v1487_v19, %v988_v55 }
 0x417   :  { %v1016_v18 = vmul.f32 %v1491_v14, %v984_v6  ;;  %v1004_v62 = vadd.f32 %v1489_v17, %v1003_v37  ;;  %v1493_v23 = vpop.eup %1492  ;;  %vm1021_vm4 = vweird.f32 %v1491_v14 }
 0x418   :  { %v993_v22 = vsel %vm992_vm0, %v1487_v19, %v989_v5  ;;  %vm1022_vm6 = vmor %vm1020_vm5, %vm1021_vm4 }
 0x419   :  { %v1017_v24 = vsub.f32 1.0, %v1016_v18  ;;  %v998_v25 = vsel %vm995_vm2, %v997_v56, %v993_v22  ;;  %v1008_v26 = vsel %vm1007_vm1, %v1489_v17, %v1004_v62 }
 0x41a   :  { %v1013_v27 = vsel %vm1010_vm3, %v1012_v21, %v1008_v26  ;;  %v1032_v28 = vmul.f32 %v1493_v23, %v998_v25 }
 0x41b   :  { %v1018_v29 = vmul.f32 %v1491_v14, %v1017_v24  ;;  %v1031_v30 = vmul.f32 %v1013_v27, %v2419_v1  ;;  %v1039_v1 = vld [vmem:[#allocation4 + $0xc0] sm:$0xff] }
 0x41d   :  { %v2487_v31 = vadd.f32 %v1032_v28, %v1031_v30  ;;  %v1019_v32 = vadd.f32 %v1491_v14, %v1018_v29 }
 0x41f   :  { %1494 = vtanh.f32 %v2487_v31  ;;  %v1023_v39 = vsel %vm1022_vm6, %v1491_v14, %v1019_v32 }
 0x420   :  { %v1028_v60 = vsel %vm1025_vm7, %v1027_v43, %v1023_v39 }
 0x425   :  { %v1495_v47 = vpop.eup %1494 }
 0x426   :  { %v1035_v44 = vmul.f32 %v1495_v47, %v1028_v60 }
 0x428   :  { %1037 = vst [vmem:[#allocation9 + $0x28] sm:$0xff] %v1035_v44  ;;  %1059 = vmatmul.f32.vlgmr.msra.gmra.mxu0 %v1035_v44  ;;  %1079 = vmatmul.f32.vlgmr.msra.gmra.mxu1 %v1035_v44 }
 0x429   :  { %1099 = vmatmul.f32.vlgmr.msra.gmra.mxu2 %v1035_v44  ;;  %1119 = vmatmul.f32.vlgmr.msra.gmra.mxu3 %v1035_v44 }
 0x4a5   :  { %v1060_v36 = vpop.f32.mrf.mxu0  ;;  %v1080_v40 = vpop.f32.mrf.mxu1 }
 0x4a6   :  { %v1123_v49 = vadd.f32 %v1060_v36, %v1039_v1  ;;  %v1124_v46 = vadd.f32 %v1080_v40, %v1040_v34  ;;  %v1195_v34 = vld [vmem:[#allocation4 + $0xf0] sm:$0xff] }
 0x4a8   :  { %v1386_v58 = vmul.f32 -1.442695, %v1123_v49  ;;  %v1387_v38 = vmul.f32 -1.442695, %v1124_v46 }
 0x4aa   :  { %1496 = vpow2.f32 %v1386_v58 }
 0x4ab   :  { %1498 = vpow2.f32 %v1387_v38 }
 0x4ac   :  { %v1100_v61 = vpop.f32.mrf.mxu2  ;;  %v1120_v41 = vpop.f32.mrf.mxu3 }
 0x4ad   :  { %v1125_v54 = vadd.f32 %v1100_v61, %v1041_v48  ;;  %v1126_v51 = vadd.f32 %v1120_v41, %v1042_v0  ;;  %v1196_v61 = vld [vmem:[#allocation4 + $0xf8] sm:$0xff] }
 0x4af   :  { %v1388_v50 = vmul.f32 -1.442695, %v1125_v54 }
 0x4b0   :  { %v1497_v59 = vpop.eup %1496 }
 0x4b1   :  { %v1499_v52 = vpop.eup %1498  ;;  %v1136_v63 = vadd.f32 1.0, %v1497_v59  ;;  %1500 = vpow2.f32 %v1388_v50 }
 0x4b2   :  { %v1137_v57 = vadd.f32 1.0, %v1499_v52 }
 0x4b3   :  { %1502 = vrcp.f32 %v1136_v63  ;;  %v1150_v19 = vand.u32 2147483648, %v1136_v63  ;;  %v1148_v9 = vand.u32 2147483647, %v1136_v63  ;;  %vm1144_vm10 = vweird.f32 %v1136_v63 }
 0x4b4   :  { %1504 = vrcp.f32 %v1137_v57  ;;  %v1165_v20 = vand.u32 2147483648, %v1137_v57  ;;  %v1163_v16 = vand.u32 2147483647, %v1137_v57  ;;  %vm1159_vm11 = vweird.f32 %v1137_v57 }
 0x4b5   :  { %v1151_v55 = vor.u32 1.1754944e-38, %v1150_v19  ;;  %vm1149_vm14 = vcmp.eq.f32.partialorder %v1148_v9, 8.507059e+37 }
 0x4b6   :  { %v1166_v37 = vor.u32 1.1754944e-38, %v1165_v20  ;;  %vm1164_vm15 = vcmp.eq.f32.partialorder %v1163_v16, 8.507059e+37 }
 0x4b7   :  { %v1501_v42 = vpop.eup %1500 }
 0x4b8   :  { %v1138_v4 = vadd.f32 1.0, %v1501_v42 }
 0x4b9   :  { %v1503_v12 = vpop.eup %1502 }
 0x4ba   :  { %v1505_v45 = vpop.eup %1504  ;;  %v1140_v13 = vmul.f32 %v1503_v12, %v1136_v63  ;;  %1506 = vrcp.f32 %v1138_v4  ;;  %vm1145_vm8 = vweird.f32 %v1503_v12  ;;  %v1180_v26 = vand.u32 2147483648, %v1138_v4 }
 0x4bb   :  { %v1155_v11 = vmul.f32 %v1505_v45, %v1137_v57  ;;  %1508 = vtanh.f32 %v1126_v51  ;;  %vm1160_vm9 = vweird.f32 %v1505_v45  ;;  %vm1146_vm12 = vmor %vm1144_vm10, %vm1145_vm8  ;;  %vm1174_vm1 = vweird.f32 %v1138_v4 }
 0x4bc   :  { %v1141_v10 = vsub.f32 1.0, %v1140_v13  ;;  %vm1161_vm13 = vmor %vm1159_vm11, %vm1160_vm9  ;;  %v1178_v27 = vand.u32 2147483647, %v1138_v4  ;;  %v1181_v29 = vor.u32 1.1754944e-38, %v1180_v26 }
 0x4bd   :  { %v1156_v6 = vsub.f32 1.0, %v1155_v11 }
 0x4be   :  { %v1142_v17 = vmul.f32 %v1503_v12, %v1141_v10  ;;  %vm1179_vm3 = vcmp.eq.f32.partialorder %v1178_v27, 8.507059e+37 }
 0x4bf   :  { %v1157_v3 = vmul.f32 %v1505_v45, %v1156_v6 }
 0x4c0   :  { %v1507_v7 = vpop.eup %1506  ;;  %v1143_v53 = vadd.f32 %v1503_v12, %v1142_v17 }
 0x4c1   :  { %v1170_v2 = vmul.f32 %v1507_v7, %v1138_v4  ;;  %v1158_v15 = vadd.f32 %v1505_v45, %v1157_v3  ;;  %v1509_v14 = vpop.eup %1508  ;;  %vm1175_vm0 = vweird.f32 %v1507_v7 }
 0x4c2   :  { %v1147_v8 = vsel %vm1146_vm12, %v1503_v12, %v1143_v53  ;;  %vm1176_vm2 = vmor %vm1174_vm1, %vm1175_vm0 }
 0x4c3   :  { %v1171_v5 = vsub.f32 1.0, %v1170_v2  ;;  %v1152_v18 = vsel %vm1149_vm14, %v1151_v55, %v1147_v8  ;;  %v1162_v56 = vsel %vm1161_vm13, %v1505_v45, %v1158_v15 }
 0x4c4   :  { %v1167_v62 = vsel %vm1164_vm15, %v1166_v37, %v1162_v56  ;;  %v1186_v21 = vmul.f32 %v1509_v14, %v1152_v18 }
 0x4c5   :  { %v1172_v22 = vmul.f32 %v1507_v7, %v1171_v5  ;;  %v1185_v23 = vmul.f32 %v1167_v62, %v2487_v31  ;;  %v1193_v31 = vld [vmem:[#allocation4 + $0xe0] sm:$0xff] }
 0x4c7   :  { %v2491_v24 = vadd.f32 %v1186_v21, %v1185_v23  ;;  %v1173_v25 = vadd.f32 %v1507_v7, %v1172_v22 }
 0x4c9   :  { %1510 = vtanh.f32 %v2491_v24  ;;  %v1177_v28 = vsel %vm1176_vm2, %v1507_v7, %v1173_v25 }
 0x4ca   :  { %v1182_v32 = vsel %vm1179_vm3, %v1181_v29, %v1177_v28 }
 0x4cf   :  { %v1511_v30 = vpop.eup %1510 }
 0x4d0   :  { %v1189_v33 = vmul.f32 %v1511_v30, %v1182_v32 }
 0x4d2   :  { %1191 = vst [vmem:[#allocation9 + $0x30] sm:$0xff] %v1189_v33  ;;  %1213 = vmatmul.f32.vlgmr.msrb.gmra.mxu0 %v1189_v33  ;;  %1233 = vmatmul.f32.vlgmr.msrb.gmra.mxu1 %v1189_v33 }
 0x4d3   :  { %1253 = vmatmul.f32.vlgmr.msrb.gmra.mxu2 %v1189_v33  ;;  %1273 = vmatmul.f32.vlgmr.msrb.gmra.mxu3 %v1189_v33 }
 0x54f   :  { %v1214_v39 = vpop.f32.mrf.mxu0  ;;  %v1234_v43 = vpop.f32.mrf.mxu1 }
 0x550   :  { %v1277_v47 = vadd.f32 %v1214_v39, %v1193_v31  ;;  %v1278_v60 = vadd.f32 %v1234_v43, %v1194_v35 }
 0x552   :  { %v1389_v44 = vmul.f32 -1.442695, %v1277_v47  ;;  %v1390_v1 = vmul.f32 -1.442695, %v1278_v60 }
 0x554   :  { %1512 = vpow2.f32 %v1389_v44 }
 0x555   :  { %1514 = vpow2.f32 %v1390_v1 }
 0x556   :  { %v1254_v36 = vpop.f32.mrf.mxu2  ;;  %v1274_v54 = vpop.f32.mrf.mxu3 }
 0x557   :  { %v1279_v40 = vadd.f32 %v1254_v36, %v1195_v34  ;;  %v1280_v63 = vadd.f32 %v1274_v54, %v1196_v61 }
 0x559   :  { %v1391_v49 = vmul.f32 -1.442695, %v1279_v40 }
 0x55a   :  { %v1513_v46 = vpop.eup %1512 }
 0x55b   :  { %v1515_v58 = vpop.eup %1514  ;;  %v1290_v38 = vadd.f32 1.0, %v1513_v46  ;;  %1516 = vpow2.f32 %v1391_v49 }
 0x55c   :  { %v1291_v48 = vadd.f32 1.0, %v1515_v58 }
 0x55d   :  { %1518 = vrcp.f32 %v1290_v38  ;;  %v1304_v12 = vand.u32 2147483648, %v1290_v38  ;;  %v1302_v13 = vand.u32 2147483647, %v1290_v38  ;;  %vm1298_vm6 = vweird.f32 %v1290_v38 }
 0x55e   :  { %1520 = vrcp.f32 %v1291_v48  ;;  %v1319_v51 = vand.u32 2147483648, %v1291_v48  ;;  %v1317_v10 = vand.u32 2147483647, %v1291_v48  ;;  %vm1313_vm7 = vweird.f32 %v1291_v48 }
 0x55f   :  { %v1305_v17 = vor.u32 1.1754944e-38, %v1304_v12  ;;  %vm1303_vm10 = vcmp.eq.f32.partialorder %v1302_v13, 8.507059e+37 }
 0x560   :  { %v1320_v3 = vor.u32 1.1754944e-38, %v1319_v51  ;;  %vm1318_vm11 = vcmp.eq.f32.partialorder %v1317_v10, 8.507059e+37 }
 0x561   :  { %v1517_v50 = vpop.eup %1516 }
 0x562   :  { %v1292_v59 = vadd.f32 1.0, %v1517_v50 }
 0x563   :  { %v1519_v52 = vpop.eup %1518 }
 0x564   :  { %v1521_v57 = vpop.eup %1520  ;;  %v1294_v0 = vmul.f32 %v1519_v52, %v1290_v38  ;;  %1522 = vrcp.f32 %v1292_v59  ;;  %vm1299_vm4 = vweird.f32 %v1519_v52  ;;  %v1334_v56 = vand.u32 2147483648, %v1292_v59 }
 0x565   :  { %v1309_v41 = vmul.f32 %v1521_v57, %v1291_v48  ;;  %1524 = vtanh.f32 %v1280_v63  ;;  %vm1314_vm5 = vweird.f32 %v1521_v57  ;;  %vm1300_vm8 = vmor %vm1298_vm6, %vm1299_vm4  ;;  %vm1328_vm13 = vweird.f32 %v1292_v59 }
 0x566   :  { %v1295_v42 = vsub.f32 1.0, %v1294_v0  ;;  %vm1315_vm9 = vmor %vm1313_vm7, %vm1314_vm5  ;;  %v1332_v62 = vand.u32 2147483647, %v1292_v59  ;;  %v1335_v22 = vor.u32 1.1754944e-38, %v1334_v56 }
 0x567   :  { %v1310_v4 = vsub.f32 1.0, %v1309_v41 }
 0x568   :  { %v1296_v45 = vmul.f32 %v1519_v52, %v1295_v42  ;;  %vm1333_vm15 = vcmp.eq.f32.partialorder %v1332_v62, 8.507059e+37 }
 0x569   :  { %v1311_v11 = vmul.f32 %v1521_v57, %v1310_v4 }
 0x56a   :  { %v1523_v6 = vpop.eup %1522  ;;  %v1297_v19 = vadd.f32 %v1519_v52, %v1296_v45 }
 0x56b   :  { %v1324_v20 = vmul.f32 %v1523_v6, %v1292_v59  ;;  %v1312_v9 = vadd.f32 %v1521_v57, %v1311_v11  ;;  %v1525_v7 = vpop.eup %1524  ;;  %vm1329_vm12 = vweird.f32 %v1523_v6 }
 0x56c   :  { %v1301_v16 = vsel %vm1300_vm8, %v1519_v52, %v1297_v19  ;;  %vm1330_vm14 = vmor %vm1328_vm13, %vm1329_vm12 }
 0x56d   :  { %v1325_v53 = vsub.f32 1.0, %v1324_v20  ;;  %v1306_v2 = vsel %vm1303_vm10, %v1305_v17, %v1301_v16  ;;  %v1316_v55 = vsel %vm1315_vm9, %v1521_v57, %v1312_v9 }
 0x56e   :  { %v1321_v15 = vsel %vm1318_vm11, %v1320_v3, %v1316_v55  ;;  %v1340_v37 = vmul.f32 %v1525_v7, %v1306_v2 }
 0x56f   :  { %v1326_v8 = vmul.f32 %v1523_v6, %v1325_v53  ;;  %v1339_v14 = vmul.f32 %v1321_v15, %v2491_v24 }
 0x571   :  { %v1341_v5 = vadd.f32 %v1340_v37, %v1339_v14  ;;  %v1327_v18 = vadd.f32 %v1523_v6, %v1326_v8 }
 0x573   :  { %1526 = vtanh.f32 %v1341_v5  ;;  %v1331_v21 = vsel %vm1330_vm14, %v1523_v6, %v1327_v18 }
 0x574   :  { %v1336_v25 = vsel %vm1333_vm15, %v1335_v22, %v1331_v21 }
 0x579   :  { %v1527_v23 = vpop.eup %1526 }
 0x57a   :  { %v1343_v24 = vmul.f32 %v1527_v23, %v1336_v25 }
 0x57c   :  { %1345 = vst [vmem:[#allocation9 + $0x38] sm:$0xff] %v1343_v24 }
 0x57d   :  { %1360 = dma.vmem_to_hbm [thread:$0]  %s1353_s1, 1024, %s1355_s23, [#allocation6], %s1676_s24, %s1676_s24, %s1677_s25  }
 0x57e   :  { %1668 = dma.done.wait [#allocation6], 1024  }
 0x57f   :  { %1669 = vsyncadd [#allocation6], 4294966272 }
 0x580   :  { %1365 = vsyncpa [#allocation5], 1 }
 0x581   :  { %1366 = vsyncpa [#allocation8], 1 }
 0x582   :  { %1367 = vsyncpa [#allocation6], 1 }

</bundles_post_ra>
